<compile_context>
chip_gen: v6e
topology: v6e:2x2x1
jax: 0.10.0
libtpu: 0.0.40
codegen_flags: <defaults>
</compile_context>

<pallas_src>
import functools
import math

import numpy as np
import jax
import jax.numpy as jnp
from jax import lax
from jax.experimental import pallas as pl
from jax.experimental.pallas import tpu as pltpu

# FLIF hyperparameters (defaults of the PyTorch module)
ALPHA = 0.2
DT = 0.1
THRESHOLD = -50.0
V_INIT = -70.0
VL = -70.0
V_RESET = -70.0
GL = 0.025
CM = 0.5

_TAU = CM / GL
_FRAC_COEF = (DT ** ALPHA) * math.gamma(2.0 - ALPHA) / CM
# Folded per-step constants:
#   v_frac  = (1 - c*gl)*v_old + [c*I + c*gl*VL - memory]
#   v_euler = (1 - dt/tau)*v_old + dt/(tau*gl)*I
_A_FRAC = 1.0 - _FRAC_COEF * GL
_B_FRAC = _FRAC_COEF * GL * VL
_A_EULER = 1.0 - DT / _TAU
_B_EULER = DT / (_TAU * GL)


def _round_up(x: int, m: int) -> int:
    return ((x + m - 1) // m) * m


def _weight_vector(num_steps: int) -> np.ndarray:
    """Replicates FLIF.weight_vector (length num_steps - 1, float32)."""
    x = num_steps
    nv = np.arange(x - 1)
    return ((x + 1 - nv) ** (1.0 - ALPHA) - (x - nv) ** (1.0 - ALPHA)).astype(np.float32)


def _build_w4(T: int, tb: int) -> np.ndarray:
    """Masked fractional-memory weight matrix, chunked for the in-kernel matmul.

    W_ext[n, m] = w[T - n + m - 1] for n >= 2 and 1 <= m <= n - 1, else 0,
    where row m (m >= 1) of the in-kernel history holds delta_trace[:, :, m-1]
    (row 0 is the dummy all-zero delta of the init step).
    Returned chunked as (NT, NT, TB, TB): W4[t, kb] = rows of time-block t,
    columns of history block kb.
    """
    w = _weight_vector(T)
    n_idx = np.arange(T)[:, None]
    m_idx = np.arange(T)[None, :]
    valid = (n_idx >= 2) & (m_idx >= 1) & (m_idx <= n_idx - 1)
    gidx = np.clip(T - n_idx + m_idx - 1, 0, T - 2)
    w_ext = np.where(valid, w[gidx], 0.0).astype(np.float32)
    nt = T // tb
    return np.ascontiguousarray(w_ext.reshape(nt, tb, nt, tb).transpose(0, 2, 1, 3))


def _flif_kernel(w4_ref, i_ref, spike_ref, v_ref,
                 v_state, delta_hist, delta_blk, base_ref,
                 *, tb, w_recent):
    # w4_ref    : VMEM (NT, TB, TB) f32  — weight chunks for this time block
    # i_ref     : VMEM (TB, PT)  f32     — input currents of this time block
    # spike_ref : VMEM (TB, PT)  bf16    — spike outputs of this time block
    # v_ref     : VMEM (TB, PT)  f32     — voltage outputs of this time block
    # v_state   : VMEM (1, PT)   scratch — V carried across time blocks
    # delta_hist: VMEM (T, PT)   scratch — full delta history (MXU operand)
    # delta_blk : VMEM (TB, PT)  scratch — deltas produced by this block
    # base_ref  : VMEM (TB, PT)  scratch — per-step base term (drive + old memory)
    t = pl.program_id(1)
    T, PT = delta_hist.shape
    n0 = t * tb

    # ---- Phase 1: old-history memory term for every step of this block (MXU).
    # base_ref <- sum over past blocks kb of  W4[t, kb] @ delta_hist[kb*TB : kb*TB+TB]
    # Only rows written by *previous* time blocks are ever read, so no full
    # history zero-init is needed.
    base_ref[...] = jnp.zeros_like(base_ref)

    def hist_chunk(kb, carry):
        w_chunk = w4_ref[kb]                               # (TB, TB)
        start = pl.multiple_of(kb * tb, tb)
        d_chunk = delta_hist[pl.ds(start, tb), :]          # (TB, PT), 8-row aligned
        base_ref[...] += jnp.dot(w_chunk, d_chunk,
                                 preferred_element_type=jnp.float32)
        return carry

    lax.fori_loop(0, t, hist_chunk, 0)

    # Fold the block's input drive and constants into the base term with one
    # dense (TB, PT) pass (full sublane utilization):
    #   base[j] = c*I[j] + c*gl*VL - memory_old[j]
    base_ref[...] = i_ref[...] * _FRAC_COEF + _B_FRAC - base_ref[...]

    # ---- Phase 2: TB sequential recurrent steps (statically unrolled).
    def do_step(j, may_be_euler):
        n = n0 + j
        v_old = v_state[0]              # (PT,)

        acc = base_ref[j]               # drive + old-history memory
        for d in range(1, j + 1):       # recent deltas written earlier this block
            acc = acc - w_recent[d] * delta_blk[j - d]

        v_new = _A_FRAC * v_old + acc
        if may_be_euler:                # n == 1 can only happen at (t == 0, j == 1)
            v_euler = _A_EULER * v_old + _B_EULER * i_ref[j]
            v_new = jnp.where(n == 1, v_euler, v_new)

        spike_b = v_old >= THRESHOLD
        v_new = jnp.where(spike_b, V_RESET, v_new)   # reset == V_new - spike*(V_new - V_reset)

        delta_blk[j] = v_new - v_old
        v_state[0] = v_new
        spike_ref[j] = spike_b.astype(spike_ref.dtype)
        v_ref[j] = v_new

    # Step j == 0 is either the global init step (n == 0) or a normal step.
    @pl.when(t == 0)
    def _init():
        v0 = jnp.full((PT,), V_INIT, jnp.float32)
        v_state[0] = v0
        delta_blk[0] = jnp.zeros((PT,), jnp.float32)   # dummy "delta" of the init step
        spike_ref[0] = jnp.zeros((PT,), spike_ref.dtype)
        v_ref[0] = v0

    @pl.when(t > 0)
    def _step0():
        do_step(0, may_be_euler=False)

    for j in range(1, tb):
        do_step(j, may_be_euler=(j == 1))

    # ---- Phase 3: commit this block's deltas to the global history.
    dst = pl.multiple_of(n0, tb)
    delta_hist[pl.ds(dst, tb), :] = delta_blk[...]


def flif_forward(i_seq: jnp.ndarray, *, tb: int = 8, pt_max: int = 2048,
                 spike_dtype=jnp.bfloat16):
    """Runs num_steps sequential FLIF.forward() calls as one Pallas kernel.

    i_seq : (T, B, S) float32 input current per step (step 0's current is
            ignored, matching the reference's N == 0 init call).
    Returns (spikes, voltages), each (T, B, S) float32.
    """
    T, B, S = i_seq.shape
    assert T % tb == 0 and tb % 8 == 0, "num_steps must be a multiple of tb, tb a multiple of 8"
    nt = T // tb

    # Flatten the neuron plane, pad to a multiple of 128 lanes, tile it.
    P = B * S
    PT = min(_round_up(P, 128), _round_up(pt_max, 128))
    NP = (P + PT - 1) // PT
    P_pad = NP * PT

    w4 = jnp.asarray(_build_w4(T, tb))
    w_np = _weight_vector(T)
    # Weights of the <= TB-1 most recent deltas (baked as compile-time constants).
    w_recent = tuple([0.0] + [float(w_np[T - 1 - d]) for d in range(1, tb)])

    x = i_seq.astype(jnp.float32).reshape(T, P)
    if P_pad != P:
        x = jnp.pad(x, ((0, 0), (0, P_pad - P)))
    x = x.reshape(T, NP, PT).transpose(1, 0, 2)          # (NP, T, PT)

    kernel = functools.partial(_flif_kernel, tb=tb, w_recent=w_recent)

    # Per-core VMEM budget: history + block scratch + double-buffered I/O.
    scratch_bytes = 4 * (T * PT + 3 * tb * PT + PT)
    io_bytes = 2 * (4 * tb * PT + 4 * tb * PT + 2 * tb * PT + 4 * nt * tb * tb)
    vmem_limit = int(min(max(2 * (scratch_bytes + io_bytes), 32 * 1024 * 1024),
                         128 * 1024 * 1024))

    spikes, volts = pl.pallas_call(
        kernel,
        grid=(NP, nt),
        in_specs=[
            pl.BlockSpec((None, nt, tb, tb), lambda p, t: (t, 0, 0, 0)),
            pl.BlockSpec((None, tb, PT), lambda p, t: (p, t, 0)),
        ],
        out_specs=[
            pl.BlockSpec((None, tb, PT), lambda p, t: (p, t, 0)),
            pl.BlockSpec((None, tb, PT), lambda p, t: (p, t, 0)),
        ],
        out_shape=(
            jax.ShapeDtypeStruct((NP, T, PT), spike_dtype),
            jax.ShapeDtypeStruct((NP, T, PT), jnp.float32),
        ),
        scratch_shapes=[
            pltpu.VMEM((1, PT), jnp.float32),    # membrane potential state
            pltpu.VMEM((T, PT), jnp.float32),    # delta_trace history (matmul RHS)
            pltpu.VMEM((tb, PT), jnp.float32),   # current block's deltas
            pltpu.VMEM((tb, PT), jnp.float32),   # per-block base term
        ],
        compiler_params=pltpu.CompilerParams(
            dimension_semantics=("parallel", "arbitrary"),  # neuron tiles parallel, time sequential
            vmem_limit_bytes=vmem_limit,
        ),
    )(w4, x)

    def unpack(y):
        y = y.transpose(1, 0, 2).reshape(T, P_pad)[:, :P].reshape(T, B, S)
        return y.astype(jnp.float32)

    return unpack(spikes), unpack(volts)


def flif_reference(i_seq: np.ndarray):
    """Pure numpy re-implementation of the PyTorch forward loop (for checking)."""
    T, B, S = i_seq.shape
    w = _weight_vector(T)

    v_old = np.zeros((B, S), np.float32)               # init_mem()
    delta = np.zeros((B, S, T), np.float32)            # delta_trace
    spikes = np.zeros((T, B, S), np.float32)
    volts = np.zeros((T, B, S), np.float32)

    for n in range(T):
        I = i_seq[n]
        if n == 0:
            v_new = np.full((B, S), V_INIT, np.float32)
            spikes[n] = 0.0
            volts[n] = v_new
            v_old = v_new
            continue
        if n == 1:
            tau = CM / GL
            v_new = v_old + DT / tau * (-v_old + I / GL)
        else:
            v_new = (DT ** ALPHA) * math.gamma(2.0 - ALPHA) * \
                (-GL * (v_old - VL) + I) / CM + v_old
            v_new = v_new - delta[:, :, 0:n - 1] @ w[-(n - 1):]
        spike = (v_old >= THRESHOLD).astype(np.float32)
        v_new = v_new - spike * (v_new - V_RESET)
        delta[:, :, n - 1] = v_new - v_old
        v_old = v_new
        spikes[n] = spike
        volts[n] = v_new
    return spikes, volts


if __name__ == "__main__":
    T, B, S = 16, 4, 160      # num_steps, batch, layer_size
    key = jax.random.PRNGKey(0)
    # Currents large enough to drive the membrane across threshold.
    i_seq = jax.random.normal(key, (T, B, S), dtype=jnp.float32) * 10.0 + 15.0

    # pt_max=256 forces several neuron tiles (exercises padding + the parallel axis).
    spikes, volts = flif_forward(i_seq, tb=8, pt_max=256)
    jax.block_until_ready((spikes, volts))

    ref_spikes, ref_volts = flif_reference(np.asarray(i_seq))
    np.testing.assert_allclose(np.asarray(spikes), ref_spikes, atol=1e-5)
    np.testing.assert_allclose(np.asarray(volts), ref_volts, rtol=1e-5, atol=2e-3)

    print("KERNEL_OK")
</pallas_src>

<mosaic_0001>
module attributes {stable_mosaic.version = 11 : i64} {
  func.func @_flif_kernel(%arg0: i32, %arg1: i32, %arg2: memref<1x2x8x8xf32, #tpu.memory_space<vmem>>, %arg3: memref<1x8x256xf32, #tpu.memory_space<vmem>>, %arg4: memref<1x8x256xbf16, #tpu.memory_space<vmem>>, %arg5: memref<1x8x256xf32, #tpu.memory_space<vmem>>, %arg6: memref<1x256xf32, #tpu.memory_space<vmem>>, %arg7: memref<16x256xf32, #tpu.memory_space<vmem>>, %arg8: memref<8x256xf32, #tpu.memory_space<vmem>>, %arg9: memref<8x256xf32, #tpu.memory_space<vmem>>) attributes {dimension_semantics = [#tpu.dimension_semantics<parallel>, #tpu.dimension_semantics<arbitrary>], iteration_bounds = array<i64: 3, 2>, scalar_prefetch = 0 : i64, scratch_operands = 4 : i64, tpu.core_type = #tpu.core_type<tc>, window_params = [{transform_indices = @transform_0, window_bounds = array<i64: 1, 2, 8, 8>}, {transform_indices = @transform_1, window_bounds = array<i64: 1, 8, 256>}, {transform_indices = @transform_2, window_bounds = array<i64: 1, 8, 256>}, {transform_indices = @transform_3, window_bounds = array<i64: 1, 8, 256>}]} {
    %c8_i32 = arith.constant 8 : i32
    %0 = arith.muli %arg1, %c8_i32 : i32
    %cst = arith.constant 0.000000e+00 : f32
    %1 = vector.broadcast %cst : f32 to vector<8x256xf32>
    %c0 = arith.constant 0 : index
    %c0_0 = arith.constant 0 : index
    %2 = vector.load %arg9[%c0, %c0_0] : memref<8x256xf32, #tpu.memory_space<vmem>>, vector<8x256xf32>
    tpu.vector_store %arg9[%c0, %c0_0], %1 {strides = array<i32>} : memref<8x256xf32, #tpu.memory_space<vmem>>, vector<8x256xf32>,
    %c0_i32 = arith.constant 0 : i32
    %c0_i32_1 = arith.constant 0 : i32
    %3 = arith.subi %arg1, %c0_i32_1 : i32
    %4 = arith.addi %c0_i32_1, %3 : i32
    %c1_i32 = arith.constant 1 : i32
    scf.for %arg10 = %c0_i32_1 to %4 step %c1_i32  : i32 {
      %c0_221 = arith.constant 0 : index
      %363 = arith.index_cast %arg10 : i32 to index
      %c0_222 = arith.constant 0 : index
      %c0_223 = arith.constant 0 : index
      %364 = vector.load %arg2[%c0_221, %363, %c0_222, %c0_223] : memref<1x2x8x8xf32, #tpu.memory_space<vmem>>, vector<1x1x8x8xf32>
      %365 = vector.shape_cast %364 : vector<1x1x8x8xf32> to vector<8x8xf32>
      %c8_i32_224 = arith.constant 8 : i32
      %366 = arith.muli %arg10, %c8_i32_224 : i32
      %367 = tpu.assume_multiple %366, 8 : i32
      %368 = arith.index_cast %367 : i32 to index
      %c0_225 = arith.constant 0 : index
      %369 = vector.load %arg7[%368, %c0_225] : memref<16x256xf32, #tpu.memory_space<vmem>>, vector<8x256xf32>
      %c0_226 = arith.constant 0 : index
      %c0_227 = arith.constant 0 : index
      %370 = vector.load %arg9[%c0_226, %c0_227] : memref<8x256xf32, #tpu.memory_space<vmem>>, vector<8x256xf32>
      %cst_228 = arith.constant dense<0.000000e+00> : vector<8x256xf32>
      %371 = tpu.matmul %365, %369, %cst_228 {dimension_numbers = #tpu.dot_dimension_numbers<[1], [0], [0], [1], [0, 0, 1, 1], [], []>} : vector<8x8xf32>, vector<8x256xf32>, vector<8x256xf32> -> vector<8x256xf32>
      %372 = arith.addf %370, %371 : vector<8x256xf32>
      %c0_229 = arith.constant 0 : index
      %c0_230 = arith.constant 0 : index
      %373 = vector.load %arg9[%c0_229, %c0_230] : memref<8x256xf32, #tpu.memory_space<vmem>>, vector<8x256xf32>
      tpu.vector_store %arg9[%c0_229, %c0_230], %372 {strides = array<i32>} : memref<8x256xf32, #tpu.memory_space<vmem>>, vector<8x256xf32>,
    }
    %c0_2 = arith.constant 0 : index
    %c0_3 = arith.constant 0 : index
    %c0_4 = arith.constant 0 : index
    %5 = vector.load %arg3[%c0_2, %c0_3, %c0_4] : memref<1x8x256xf32, #tpu.memory_space<vmem>>, vector<1x8x256xf32>
    %6 = vector.shape_cast %5 : vector<1x8x256xf32> to vector<8x256xf32>
    %cst_5 = arith.constant 1.17532682 : f32
    %7 = vector.broadcast %cst_5 : f32 to vector<8x256xf32>
    %8 = arith.mulf %6, %7 : vector<8x256xf32>
    %cst_6 = arith.constant -2.05682206 : f32
    %9 = vector.broadcast %cst_6 : f32 to vector<8x256xf32>
    %10 = arith.addf %8, %9 : vector<8x256xf32>
    %c0_7 = arith.constant 0 : index
    %c0_8 = arith.constant 0 : index
    %11 = vector.load %arg9[%c0_7, %c0_8] : memref<8x256xf32, #tpu.memory_space<vmem>>, vector<8x256xf32>
    %12 = arith.subf %10, %11 : vector<8x256xf32>
    %c0_9 = arith.constant 0 : index
    %c0_10 = arith.constant 0 : index
    %13 = vector.load %arg9[%c0_9, %c0_10] : memref<8x256xf32, #tpu.memory_space<vmem>>, vector<8x256xf32>
    tpu.vector_store %arg9[%c0_9, %c0_10], %12 {strides = array<i32>} : memref<8x256xf32, #tpu.memory_space<vmem>>, vector<8x256xf32>,
    %c0_i32_11 = arith.constant 0 : i32
    %14 = arith.cmpi eq, %arg1, %c0_i32_11 : i32
    %15 = arith.extui %14 : i1 to i32
    %c0_i32_12 = arith.constant 0 : i32
    %16 = arith.cmpi ne, %15, %c0_i32_12 : i32
    scf.if %16 {
      %cst_221 = arith.constant -7.000000e+01 : f32
      %363 = vector.broadcast %cst_221 : f32 to vector<256xf32>
      %c0_222 = arith.constant 0 : index
      %c0_223 = arith.constant 0 : index
      %364 = vector.load %arg6[%c0_222, %c0_223] : memref<1x256xf32, #tpu.memory_space<vmem>>, vector<1x256xf32>
      %365 = vector.shape_cast %364 : vector<1x256xf32> to vector<256xf32>
      %366 = vector.shape_cast %363 : vector<256xf32> to vector<1x256xf32>
      tpu.vector_store %arg6[%c0_222, %c0_223], %366 {strides = array<i32>} : memref<1x256xf32, #tpu.memory_space<vmem>>, vector<1x256xf32>,
      %cst_224 = arith.constant 0.000000e+00 : f32
      %367 = vector.broadcast %cst_224 : f32 to vector<256xf32>
      %c0_225 = arith.constant 0 : index
      %c0_226 = arith.constant 0 : index
      %368 = vector.load %arg8[%c0_225, %c0_226] : memref<8x256xf32, #tpu.memory_space<vmem>>, vector<1x256xf32>
      %369 = vector.shape_cast %368 : vector<1x256xf32> to vector<256xf32>
      %370 = vector.shape_cast %367 : vector<256xf32> to vector<1x256xf32>
      tpu.vector_store %arg8[%c0_225, %c0_226], %370 {strides = array<i32>} : memref<8x256xf32, #tpu.memory_space<vmem>>, vector<1x256xf32>,
      %cst_227 = arith.constant 0.000000e+00 : bf16
      %371 = vector.broadcast %cst_227 : bf16 to vector<256xbf16>
      %c0_228 = arith.constant 0 : index
      %c0_229 = arith.constant 0 : index
      %c0_230 = arith.constant 0 : index
      %372 = vector.load %arg4[%c0_228, %c0_229, %c0_230] : memref<1x8x256xbf16, #tpu.memory_space<vmem>>, vector<1x1x256xbf16>
      %373 = vector.shape_cast %372 : vector<1x1x256xbf16> to vector<256xbf16>
      %374 = vector.shape_cast %371 : vector<256xbf16> to vector<1x1x256xbf16>
      tpu.vector_store %arg4[%c0_228, %c0_229, %c0_230], %374 {strides = array<i32>} : memref<1x8x256xbf16, #tpu.memory_space<vmem>>, vector<1x1x256xbf16>,
      %c0_231 = arith.constant 0 : index
      %c0_232 = arith.constant 0 : index
      %c0_233 = arith.constant 0 : index
      %375 = vector.load %arg5[%c0_231, %c0_232, %c0_233] : memref<1x8x256xf32, #tpu.memory_space<vmem>>, vector<1x1x256xf32>
      %376 = vector.shape_cast %375 : vector<1x1x256xf32> to vector<256xf32>
      %377 = vector.shape_cast %363 : vector<256xf32> to vector<1x1x256xf32>
      tpu.vector_store %arg5[%c0_231, %c0_232, %c0_233], %377 {strides = array<i32>} : memref<1x8x256xf32, #tpu.memory_space<vmem>>, vector<1x1x256xf32>,
    } else {
    }
    %c0_i32_13 = arith.constant 0 : i32
    %17 = arith.cmpi sgt, %arg1, %c0_i32_13 : i32
    %18 = arith.extui %17 : i1 to i32
    %c0_i32_14 = arith.constant 0 : i32
    %19 = arith.cmpi ne, %18, %c0_i32_14 : i32
    scf.if %19 {
      %c0_221 = arith.constant 0 : index
      %c0_222 = arith.constant 0 : index
      %363 = vector.load %arg6[%c0_221, %c0_222] : memref<1x256xf32, #tpu.memory_space<vmem>>, vector<1x256xf32>
      %364 = vector.shape_cast %363 : vector<1x256xf32> to vector<256xf32>
      %c0_223 = arith.constant 0 : index
      %c0_224 = arith.constant 0 : index
      %365 = vector.load %arg9[%c0_223, %c0_224] : memref<8x256xf32, #tpu.memory_space<vmem>>, vector<1x256xf32>
      %366 = vector.shape_cast %365 : vector<1x256xf32> to vector<256xf32>
      %cst_225 = arith.constant 0.970616817 : f32
      %367 = vector.broadcast %cst_225 : f32 to vector<256xf32>
      %368 = arith.mulf %367, %364 : vector<256xf32>
      %369 = arith.addf %368, %366 : vector<256xf32>
      %cst_226 = arith.constant -5.000000e+01 : f32
      %370 = vector.broadcast %cst_226 : f32 to vector<256xf32>
      %371 = arith.cmpf oge, %364, %370 : vector<256xf32>
      %cst_227 = arith.constant -7.000000e+01 : f32
      %372 = vector.broadcast %cst_227 : f32 to vector<256xf32>
      %373 = arith.select %371, %372, %369 : vector<256xi1>, vector<256xf32>
      %374 = arith.subf %373, %364 : vector<256xf32>
      %c0_228 = arith.constant 0 : index
      %c0_229 = arith.constant 0 : index
      %375 = vector.load %arg8[%c0_228, %c0_229] : memref<8x256xf32, #tpu.memory_space<vmem>>, vector<1x256xf32>
      %376 = vector.shape_cast %375 : vector<1x256xf32> to vector<256xf32>
      %377 = vector.shape_cast %374 : vector<256xf32> to vector<1x256xf32>
      tpu.vector_store %arg8[%c0_228, %c0_229], %377 {strides = array<i32>} : memref<8x256xf32, #tpu.memory_space<vmem>>, vector<1x256xf32>,
      %c0_230 = arith.constant 0 : index
      %c0_231 = arith.constant 0 : index
      %378 = vector.load %arg6[%c0_230, %c0_231] : memref<1x256xf32, #tpu.memory_space<vmem>>, vector<1x256xf32>
      %379 = vector.shape_cast %378 : vector<1x256xf32> to vector<256xf32>
      %380 = vector.shape_cast %373 : vector<256xf32> to vector<1x256xf32>
      tpu.vector_store %arg6[%c0_230, %c0_231], %380 {strides = array<i32>} : memref<1x256xf32, #tpu.memory_space<vmem>>, vector<1x256xf32>,
      %381 = arith.extui %371 : vector<256xi1> to vector<256xi32>
      %382 = arith.sitofp %381 : vector<256xi32> to vector<256xf32>
      %383 = arith.truncf %382 : vector<256xf32> to vector<256xbf16>
      %c0_232 = arith.constant 0 : index
      %c0_233 = arith.constant 0 : index
      %c0_234 = arith.constant 0 : index
      %384 = vector.load %arg4[%c0_232, %c0_233, %c0_234] : memref<1x8x256xbf16, #tpu.memory_space<vmem>>, vector<1x1x256xbf16>
      %385 = vector.shape_cast %384 : vector<1x1x256xbf16> to vector<256xbf16>
      %386 = vector.shape_cast %383 : vector<256xbf16> to vector<1x1x256xbf16>
      tpu.vector_store %arg4[%c0_232, %c0_233, %c0_234], %386 {strides = array<i32>} : memref<1x8x256xbf16, #tpu.memory_space<vmem>>, vector<1x1x256xbf16>,
      %c0_235 = arith.constant 0 : index
      %c0_236 = arith.constant 0 : index
      %c0_237 = arith.constant 0 : index
      %387 = vector.load %arg5[%c0_235, %c0_236, %c0_237] : memref<1x8x256xf32, #tpu.memory_space<vmem>>, vector<1x1x256xf32>
      %388 = vector.shape_cast %387 : vector<1x1x256xf32> to vector<256xf32>
      %389 = vector.shape_cast %373 : vector<256xf32> to vector<1x1x256xf32>
      tpu.vector_store %arg5[%c0_235, %c0_236, %c0_237], %389 {strides = array<i32>} : memref<1x8x256xf32, #tpu.memory_space<vmem>>, vector<1x1x256xf32>,
    } else {
    }
    %c1_i32_15 = arith.constant 1 : i32
    %20 = arith.addi %0, %c1_i32_15 : i32
    %c0_16 = arith.constant 0 : index
    %c0_17 = arith.constant 0 : index
    %21 = vector.load %arg6[%c0_16, %c0_17] : memref<1x256xf32, #tpu.memory_space<vmem>>, vector<1x256xf32>
    %22 = vector.shape_cast %21 : vector<1x256xf32> to vector<256xf32>
    %c1 = arith.constant 1 : index
    %c0_18 = arith.constant 0 : index
    %23 = vector.load %arg9[%c1, %c0_18] : memref<8x256xf32, #tpu.memory_space<vmem>>, vector<1x256xf32>
    %24 = vector.shape_cast %23 : vector<1x256xf32> to vector<256xf32>
    %c0_19 = arith.constant 0 : index
    %c0_20 = arith.constant 0 : index
    %25 = vector.load %arg8[%c0_19, %c0_20] : memref<8x256xf32, #tpu.memory_space<vmem>>, vector<1x256xf32>
    %26 = vector.shape_cast %25 : vector<1x256xf32> to vector<256xf32>
    %cst_21 = arith.constant 0.667123556 : f32
    %27 = vector.broadcast %cst_21 : f32 to vector<256xf32>
    %28 = arith.mulf %27, %26 : vector<256xf32>
    %29 = arith.subf %24, %28 : vector<256xf32>
    %cst_22 = arith.constant 0.970616817 : f32
    %30 = vector.broadcast %cst_22 : f32 to vector<256xf32>
    %31 = arith.mulf %30, %22 : vector<256xf32>
    %32 = arith.addf %31, %29 : vector<256xf32>
    %cst_23 = arith.constant 9.950000e-01 : f32
    %33 = vector.broadcast %cst_23 : f32 to vector<256xf32>
    %34 = arith.mulf %33, %22 : vector<256xf32>
    %c0_24 = arith.constant 0 : index
    %c1_25 = arith.constant 1 : index
    %c0_26 = arith.constant 0 : index
    %35 = vector.load %arg3[%c0_24, %c1_25, %c0_26] : memref<1x8x256xf32, #tpu.memory_space<vmem>>, vector<1x1x256xf32>
    %36 = vector.shape_cast %35 : vector<1x1x256xf32> to vector<256xf32>
    %cst_27 = arith.constant 2.000000e-01 : f32
    %37 = vector.broadcast %cst_27 : f32 to vector<256xf32>
    %38 = arith.mulf %37, %36 : vector<256xf32>
    %39 = arith.addf %34, %38 : vector<256xf32>
    %c1_i32_28 = arith.constant 1 : i32
    %40 = arith.cmpi eq, %20, %c1_i32_28 : i32
    %41 = arith.select %40, %39, %32 : vector<256xf32>
    %cst_29 = arith.constant -5.000000e+01 : f32
    %42 = vector.broadcast %cst_29 : f32 to vector<256xf32>
    %43 = arith.cmpf oge, %22, %42 : vector<256xf32>
    %cst_30 = arith.constant -7.000000e+01 : f32
    %44 = vector.broadcast %cst_30 : f32 to vector<256xf32>
    %45 = arith.select %43, %44, %41 : vector<256xi1>, vector<256xf32>
    %46 = arith.subf %45, %22 : vector<256xf32>
    %c1_31 = arith.constant 1 : index
    %c0_32 = arith.constant 0 : index
    %47 = vector.load %arg8[%c1_31, %c0_32] : memref<8x256xf32, #tpu.memory_space<vmem>>, vector<1x256xf32>
    %48 = vector.shape_cast %47 : vector<1x256xf32> to vector<256xf32>
    %49 = vector.shape_cast %46 : vector<256xf32> to vector<1x256xf32>
    tpu.vector_store %arg8[%c1_31, %c0_32], %49 {strides = array<i32>} : memref<8x256xf32, #tpu.memory_space<vmem>>, vector<1x256xf32>,
    %c0_33 = arith.constant 0 : index
    %c0_34 = arith.constant 0 : index
    %50 = vector.load %arg6[%c0_33, %c0_34] : memref<1x256xf32, #tpu.memory_space<vmem>>, vector<1x256xf32>
    %51 = vector.shape_cast %50 : vector<1x256xf32> to vector<256xf32>
    %52 = vector.shape_cast %45 : vector<256xf32> to vector<1x256xf32>
    tpu.vector_store %arg6[%c0_33, %c0_34], %52 {strides = array<i32>} : memref<1x256xf32, #tpu.memory_space<vmem>>, vector<1x256xf32>,
    %53 = arith.extui %43 : vector<256xi1> to vector<256xi32>
    %54 = arith.sitofp %53 : vector<256xi32> to vector<256xf32>
    %55 = arith.truncf %54 : vector<256xf32> to vector<256xbf16>
    %c0_35 = arith.constant 0 : index
    %c1_36 = arith.constant 1 : index
    %c0_37 = arith.constant 0 : index
    %56 = vector.load %arg4[%c0_35, %c1_36, %c0_37] : memref<1x8x256xbf16, #tpu.memory_space<vmem>>, vector<1x1x256xbf16>
    %57 = vector.shape_cast %56 : vector<1x1x256xbf16> to vector<256xbf16>
    %58 = vector.shape_cast %55 : vector<256xbf16> to vector<1x1x256xbf16>
    tpu.vector_store %arg4[%c0_35, %c1_36, %c0_37], %58 {strides = array<i32>} : memref<1x8x256xbf16, #tpu.memory_space<vmem>>, vector<1x1x256xbf16>,
    %c0_38 = arith.constant 0 : index
    %c1_39 = arith.constant 1 : index
    %c0_40 = arith.constant 0 : index
    %59 = vector.load %arg5[%c0_38, %c1_39, %c0_40] : memref<1x8x256xf32, #tpu.memory_space<vmem>>, vector<1x1x256xf32>
    %60 = vector.shape_cast %59 : vector<1x1x256xf32> to vector<256xf32>
    %61 = vector.shape_cast %45 : vector<256xf32> to vector<1x1x256xf32>
    tpu.vector_store %arg5[%c0_38, %c1_39, %c0_40], %61 {strides = array<i32>} : memref<1x8x256xf32, #tpu.memory_space<vmem>>, vector<1x1x256xf32>,
    %c0_41 = arith.constant 0 : index
    %c0_42 = arith.constant 0 : index
    %62 = vector.load %arg6[%c0_41, %c0_42] : memref<1x256xf32, #tpu.memory_space<vmem>>, vector<1x256xf32>
    %63 = vector.shape_cast %62 : vector<1x256xf32> to vector<256xf32>
    %c2 = arith.constant 2 : index
    %c0_43 = arith.constant 0 : index
    %64 = vector.load %arg9[%c2, %c0_43] : memref<8x256xf32, #tpu.memory_space<vmem>>, vector<1x256xf32>
    %65 = vector.shape_cast %64 : vector<1x256xf32> to vector<256xf32>
    %c1_44 = arith.constant 1 : index
    %c0_45 = arith.constant 0 : index
    %66 = vector.load %arg8[%c1_44, %c0_45] : memref<8x256xf32, #tpu.memory_space<vmem>>, vector<1x256xf32>
    %67 = vector.shape_cast %66 : vector<1x256xf32> to vector<256xf32>
    %cst_46 = arith.constant 0.667123556 : f32
    %68 = vector.broadcast %cst_46 : f32 to vector<256xf32>
    %69 = arith.mulf %68, %67 : vector<256xf32>
    %70 = arith.subf %65, %69 : vector<256xf32>
    %c0_47 = arith.constant 0 : index
    %c0_48 = arith.constant 0 : index
    %71 = vector.load %arg8[%c0_47, %c0_48] : memref<8x256xf32, #tpu.memory_space<vmem>>, vector<1x256xf32>
    %72 = vector.shape_cast %71 : vector<1x256xf32> to vector<256xf32>
    %cst_49 = arith.constant 0.623208463 : f32
    %73 = vector.broadcast %cst_49 : f32 to vector<256xf32>
    %74 = arith.mulf %73, %72 : vector<256xf32>
    %75 = arith.subf %70, %74 : vector<256xf32>
    %cst_50 = arith.constant 0.970616817 : f32
    %76 = vector.broadcast %cst_50 : f32 to vector<256xf32>
    %77 = arith.mulf %76, %63 : vector<256xf32>
    %78 = arith.addf %77, %75 : vector<256xf32>
    %cst_51 = arith.constant -5.000000e+01 : f32
    %79 = vector.broadcast %cst_51 : f32 to vector<256xf32>
    %80 = arith.cmpf oge, %63, %79 : vector<256xf32>
    %cst_52 = arith.constant -7.000000e+01 : f32
    %81 = vector.broadcast %cst_52 : f32 to vector<256xf32>
    %82 = arith.select %80, %81, %78 : vector<256xi1>, vector<256xf32>
    %83 = arith.subf %82, %63 : vector<256xf32>
    %c2_53 = arith.constant 2 : index
    %c0_54 = arith.constant 0 : index
    %84 = vector.load %arg8[%c2_53, %c0_54] : memref<8x256xf32, #tpu.memory_space<vmem>>, vector<1x256xf32>
    %85 = vector.shape_cast %84 : vector<1x256xf32> to vector<256xf32>
    %86 = vector.shape_cast %83 : vector<256xf32> to vector<1x256xf32>
    tpu.vector_store %arg8[%c2_53, %c0_54], %86 {strides = array<i32>} : memref<8x256xf32, #tpu.memory_space<vmem>>, vector<1x256xf32>,
    %c0_55 = arith.constant 0 : index
    %c0_56 = arith.constant 0 : index
    %87 = vector.load %arg6[%c0_55, %c0_56] : memref<1x256xf32, #tpu.memory_space<vmem>>, vector<1x256xf32>
    %88 = vector.shape_cast %87 : vector<1x256xf32> to vector<256xf32>
    %89 = vector.shape_cast %82 : vector<256xf32> to vector<1x256xf32>
    tpu.vector_store %arg6[%c0_55, %c0_56], %89 {strides = array<i32>} : memref<1x256xf32, #tpu.memory_space<vmem>>, vector<1x256xf32>,
    %90 = arith.extui %80 : vector<256xi1> to vector<256xi32>
    %91 = arith.sitofp %90 : vector<256xi32> to vector<256xf32>
    %92 = arith.truncf %91 : vector<256xf32> to vector<256xbf16>
    %c0_57 = arith.constant 0 : index
    %c2_58 = arith.constant 2 : index
    %c0_59 = arith.constant 0 : index
    %93 = vector.load %arg4[%c0_57, %c2_58, %c0_59] : memref<1x8x256xbf16, #tpu.memory_space<vmem>>, vector<1x1x256xbf16>
    %94 = vector.shape_cast %93 : vector<1x1x256xbf16> to vector<256xbf16>
    %95 = vector.shape_cast %92 : vector<256xbf16> to vector<1x1x256xbf16>
    tpu.vector_store %arg4[%c0_57, %c2_58, %c0_59], %95 {strides = array<i32>} : memref<1x8x256xbf16, #tpu.memory_space<vmem>>, vector<1x1x256xbf16>,
    %c0_60 = arith.constant 0 : index
    %c2_61 = arith.constant 2 : index
    %c0_62 = arith.constant 0 : index
    %96 = vector.load %arg5[%c0_60, %c2_61, %c0_62] : memref<1x8x256xf32, #tpu.memory_space<vmem>>, vector<1x1x256xf32>
    %97 = vector.shape_cast %96 : vector<1x1x256xf32> to vector<256xf32>
    %98 = vector.shape_cast %82 : vector<256xf32> to vector<1x1x256xf32>
    tpu.vector_store %arg5[%c0_60, %c2_61, %c0_62], %98 {strides = array<i32>} : memref<1x8x256xf32, #tpu.memory_space<vmem>>, vector<1x1x256xf32>,
    %c0_63 = arith.constant 0 : index
    %c0_64 = arith.constant 0 : index
    %99 = vector.load %arg6[%c0_63, %c0_64] : memref<1x256xf32, #tpu.memory_space<vmem>>, vector<1x256xf32>
    %100 = vector.shape_cast %99 : vector<1x256xf32> to vector<256xf32>
    %c3 = arith.constant 3 : index
    %c0_65 = arith.constant 0 : index
    %101 = vector.load %arg9[%c3, %c0_65] : memref<8x256xf32, #tpu.memory_space<vmem>>, vector<1x256xf32>
    %102 = vector.shape_cast %101 : vector<1x256xf32> to vector<256xf32>
    %c2_66 = arith.constant 2 : index
    %c0_67 = arith.constant 0 : index
    %103 = vector.load %arg8[%c2_66, %c0_67] : memref<8x256xf32, #tpu.memory_space<vmem>>, vector<1x256xf32>
    %104 = vector.shape_cast %103 : vector<1x256xf32> to vector<256xf32>
    %cst_68 = arith.constant 0.667123556 : f32
    %105 = vector.broadcast %cst_68 : f32 to vector<256xf32>
    %106 = arith.mulf %105, %104 : vector<256xf32>
    %107 = arith.subf %102, %106 : vector<256xf32>
    %c1_69 = arith.constant 1 : index
    %c0_70 = arith.constant 0 : index
    %108 = vector.load %arg8[%c1_69, %c0_70] : memref<8x256xf32, #tpu.memory_space<vmem>>, vector<1x256xf32>
    %109 = vector.shape_cast %108 : vector<1x256xf32> to vector<256xf32>
    %cst_71 = arith.constant 0.623208463 : f32
    %110 = vector.broadcast %cst_71 : f32 to vector<256xf32>
    %111 = arith.mulf %110, %109 : vector<256xf32>
    %112 = arith.subf %107, %111 : vector<256xf32>
    %c0_72 = arith.constant 0 : index
    %c0_73 = arith.constant 0 : index
    %113 = vector.load %arg8[%c0_72, %c0_73] : memref<8x256xf32, #tpu.memory_space<vmem>>, vector<1x256xf32>
    %114 = vector.shape_cast %113 : vector<1x256xf32> to vector<256xf32>
    %cst_74 = arith.constant 0.592465162 : f32
    %115 = vector.broadcast %cst_74 : f32 to vector<256xf32>
    %116 = arith.mulf %115, %114 : vector<256xf32>
    %117 = arith.subf %112, %116 : vector<256xf32>
    %cst_75 = arith.constant 0.970616817 : f32
    %118 = vector.broadcast %cst_75 : f32 to vector<256xf32>
    %119 = arith.mulf %118, %100 : vector<256xf32>
    %120 = arith.addf %119, %117 : vector<256xf32>
    %cst_76 = arith.constant -5.000000e+01 : f32
    %121 = vector.broadcast %cst_76 : f32 to vector<256xf32>
    %122 = arith.cmpf oge, %100, %121 : vector<256xf32>
    %cst_77 = arith.constant -7.000000e+01 : f32
    %123 = vector.broadcast %cst_77 : f32 to vector<256xf32>
    %124 = arith.select %122, %123, %120 : vector<256xi1>, vector<256xf32>
    %125 = arith.subf %124, %100 : vector<256xf32>
    %c3_78 = arith.constant 3 : index
    %c0_79 = arith.constant 0 : index
    %126 = vector.load %arg8[%c3_78, %c0_79] : memref<8x256xf32, #tpu.memory_space<vmem>>, vector<1x256xf32>
    %127 = vector.shape_cast %126 : vector<1x256xf32> to vector<256xf32>
    %128 = vector.shape_cast %125 : vector<256xf32> to vector<1x256xf32>
    tpu.vector_store %arg8[%c3_78, %c0_79], %128 {strides = array<i32>} : memref<8x256xf32, #tpu.memory_space<vmem>>, vector<1x256xf32>,
    %c0_80 = arith.constant 0 : index
    %c0_81 = arith.constant 0 : index
    %129 = vector.load %arg6[%c0_80, %c0_81] : memref<1x256xf32, #tpu.memory_space<vmem>>, vector<1x256xf32>
    %130 = vector.shape_cast %129 : vector<1x256xf32> to vector<256xf32>
    %131 = vector.shape_cast %124 : vector<256xf32> to vector<1x256xf32>
    tpu.vector_store %arg6[%c0_80, %c0_81], %131 {strides = array<i32>} : memref<1x256xf32, #tpu.memory_space<vmem>>, vector<1x256xf32>,
    %132 = arith.extui %122 : vector<256xi1> to vector<256xi32>
    %133 = arith.sitofp %132 : vector<256xi32> to vector<256xf32>
    %134 = arith.truncf %133 : vector<256xf32> to vector<256xbf16>
    %c0_82 = arith.constant 0 : index
    %c3_83 = arith.constant 3 : index
    %c0_84 = arith.constant 0 : index
    %135 = vector.load %arg4[%c0_82, %c3_83, %c0_84] : memref<1x8x256xbf16, #tpu.memory_space<vmem>>, vector<1x1x256xbf16>
    %136 = vector.shape_cast %135 : vector<1x1x256xbf16> to vector<256xbf16>
    %137 = vector.shape_cast %134 : vector<256xbf16> to vector<1x1x256xbf16>
    tpu.vector_store %arg4[%c0_82, %c3_83, %c0_84], %137 {strides = array<i32>} : memref<1x8x256xbf16, #tpu.memory_space<vmem>>, vector<1x1x256xbf16>,
    %c0_85 = arith.constant 0 : index
    %c3_86 = arith.constant 3 : index
    %c0_87 = arith.constant 0 : index
    %138 = vector.load %arg5[%c0_85, %c3_86, %c0_87] : memref<1x8x256xf32, #tpu.memory_space<vmem>>, vector<1x1x256xf32>
    %139 = vector.shape_cast %138 : vector<1x1x256xf32> to vector<256xf32>
    %140 = vector.shape_cast %124 : vector<256xf32> to vector<1x1x256xf32>
    tpu.vector_store %arg5[%c0_85, %c3_86, %c0_87], %140 {strides = array<i32>} : memref<1x8x256xf32, #tpu.memory_space<vmem>>, vector<1x1x256xf32>,
    %c0_88 = arith.constant 0 : index
    %c0_89 = arith.constant 0 : index
    %141 = vector.load %arg6[%c0_88, %c0_89] : memref<1x256xf32, #tpu.memory_space<vmem>>, vector<1x256xf32>
    %142 = vector.shape_cast %141 : vector<1x256xf32> to vector<256xf32>
    %c4 = arith.constant 4 : index
    %c0_90 = arith.constant 0 : index
    %143 = vector.load %arg9[%c4, %c0_90] : memref<8x256xf32, #tpu.memory_space<vmem>>, vector<1x256xf32>
    %144 = vector.shape_cast %143 : vector<1x256xf32> to vector<256xf32>
    %c3_91 = arith.constant 3 : index
    %c0_92 = arith.constant 0 : index
    %145 = vector.load %arg8[%c3_91, %c0_92] : memref<8x256xf32, #tpu.memory_space<vmem>>, vector<1x256xf32>
    %146 = vector.shape_cast %145 : vector<1x256xf32> to vector<256xf32>
    %cst_93 = arith.constant 0.667123556 : f32
    %147 = vector.broadcast %cst_93 : f32 to vector<256xf32>
    %148 = arith.mulf %147, %146 : vector<256xf32>
    %149 = arith.subf %144, %148 : vector<256xf32>
    %c2_94 = arith.constant 2 : index
    %c0_95 = arith.constant 0 : index
    %150 = vector.load %arg8[%c2_94, %c0_95] : memref<8x256xf32, #tpu.memory_space<vmem>>, vector<1x256xf32>
    %151 = vector.shape_cast %150 : vector<1x256xf32> to vector<256xf32>
    %cst_96 = arith.constant 0.623208463 : f32
    %152 = vector.broadcast %cst_96 : f32 to vector<256xf32>
    %153 = arith.mulf %152, %151 : vector<256xf32>
    %154 = arith.subf %149, %153 : vector<256xf32>
    %c1_97 = arith.constant 1 : index
    %c0_98 = arith.constant 0 : index
    %155 = vector.load %arg8[%c1_97, %c0_98] : memref<8x256xf32, #tpu.memory_space<vmem>>, vector<1x256xf32>
    %156 = vector.shape_cast %155 : vector<1x256xf32> to vector<256xf32>
    %cst_99 = arith.constant 0.592465162 : f32
    %157 = vector.broadcast %cst_99 : f32 to vector<256xf32>
    %158 = arith.mulf %157, %156 : vector<256xf32>
    %159 = arith.subf %154, %158 : vector<256xf32>
    %c0_100 = arith.constant 0 : index
    %c0_101 = arith.constant 0 : index
    %160 = vector.load %arg8[%c0_100, %c0_101] : memref<8x256xf32, #tpu.memory_space<vmem>>, vector<1x256xf32>
    %161 = vector.shape_cast %160 : vector<1x256xf32> to vector<256xf32>
    %cst_102 = arith.constant 0.569064379 : f32
    %162 = vector.broadcast %cst_102 : f32 to vector<256xf32>
    %163 = arith.mulf %162, %161 : vector<256xf32>
    %164 = arith.subf %159, %163 : vector<256xf32>
    %cst_103 = arith.constant 0.970616817 : f32
    %165 = vector.broadcast %cst_103 : f32 to vector<256xf32>
    %166 = arith.mulf %165, %142 : vector<256xf32>
    %167 = arith.addf %166, %164 : vector<256xf32>
    %cst_104 = arith.constant -5.000000e+01 : f32
    %168 = vector.broadcast %cst_104 : f32 to vector<256xf32>
    %169 = arith.cmpf oge, %142, %168 : vector<256xf32>
    %cst_105 = arith.constant -7.000000e+01 : f32
    %170 = vector.broadcast %cst_105 : f32 to vector<256xf32>
    %171 = arith.select %169, %170, %167 : vector<256xi1>, vector<256xf32>
    %172 = arith.subf %171, %142 : vector<256xf32>
    %c4_106 = arith.constant 4 : index
    %c0_107 = arith.constant 0 : index
    %173 = vector.load %arg8[%c4_106, %c0_107] : memref<8x256xf32, #tpu.memory_space<vmem>>, vector<1x256xf32>
    %174 = vector.shape_cast %173 : vector<1x256xf32> to vector<256xf32>
    %175 = vector.shape_cast %172 : vector<256xf32> to vector<1x256xf32>
    tpu.vector_store %arg8[%c4_106, %c0_107], %175 {strides = array<i32>} : memref<8x256xf32, #tpu.memory_space<vmem>>, vector<1x256xf32>,
    %c0_108 = arith.constant 0 : index
    %c0_109 = arith.constant 0 : index
    %176 = vector.load %arg6[%c0_108, %c0_109] : memref<1x256xf32, #tpu.memory_space<vmem>>, vector<1x256xf32>
    %177 = vector.shape_cast %176 : vector<1x256xf32> to vector<256xf32>
    %178 = vector.shape_cast %171 : vector<256xf32> to vector<1x256xf32>
    tpu.vector_store %arg6[%c0_108, %c0_109], %178 {strides = array<i32>} : memref<1x256xf32, #tpu.memory_space<vmem>>, vector<1x256xf32>,
    %179 = arith.extui %169 : vector<256xi1> to vector<256xi32>
    %180 = arith.sitofp %179 : vector<256xi32> to vector<256xf32>
    %181 = arith.truncf %180 : vector<256xf32> to vector<256xbf16>
    %c0_110 = arith.constant 0 : index
    %c4_111 = arith.constant 4 : index
    %c0_112 = arith.constant 0 : index
    %182 = vector.load %arg4[%c0_110, %c4_111, %c0_112] : memref<1x8x256xbf16, #tpu.memory_space<vmem>>, vector<1x1x256xbf16>
    %183 = vector.shape_cast %182 : vector<1x1x256xbf16> to vector<256xbf16>
    %184 = vector.shape_cast %181 : vector<256xbf16> to vector<1x1x256xbf16>
    tpu.vector_store %arg4[%c0_110, %c4_111, %c0_112], %184 {strides = array<i32>} : memref<1x8x256xbf16, #tpu.memory_space<vmem>>, vector<1x1x256xbf16>,
    %c0_113 = arith.constant 0 : index
    %c4_114 = arith.constant 4 : index
    %c0_115 = arith.constant 0 : index
    %185 = vector.load %arg5[%c0_113, %c4_114, %c0_115] : memref<1x8x256xf32, #tpu.memory_space<vmem>>, vector<1x1x256xf32>
    %186 = vector.shape_cast %185 : vector<1x1x256xf32> to vector<256xf32>
    %187 = vector.shape_cast %171 : vector<256xf32> to vector<1x1x256xf32>
    tpu.vector_store %arg5[%c0_113, %c4_114, %c0_115], %187 {strides = array<i32>} : memref<1x8x256xf32, #tpu.memory_space<vmem>>, vector<1x1x256xf32>,
    %c0_116 = arith.constant 0 : index
    %c0_117 = arith.constant 0 : index
    %188 = vector.load %arg6[%c0_116, %c0_117] : memref<1x256xf32, #tpu.memory_space<vmem>>, vector<1x256xf32>
    %189 = vector.shape_cast %188 : vector<1x256xf32> to vector<256xf32>
    %c5 = arith.constant 5 : index
    %c0_118 = arith.constant 0 : index
    %190 = vector.load %arg9[%c5, %c0_118] : memref<8x256xf32, #tpu.memory_space<vmem>>, vector<1x256xf32>
    %191 = vector.shape_cast %190 : vector<1x256xf32> to vector<256xf32>
    %c4_119 = arith.constant 4 : index
    %c0_120 = arith.constant 0 : index
    %192 = vector.load %arg8[%c4_119, %c0_120] : memref<8x256xf32, #tpu.memory_space<vmem>>, vector<1x256xf32>
    %193 = vector.shape_cast %192 : vector<1x256xf32> to vector<256xf32>
    %cst_121 = arith.constant 0.667123556 : f32
    %194 = vector.broadcast %cst_121 : f32 to vector<256xf32>
    %195 = arith.mulf %194, %193 : vector<256xf32>
    %196 = arith.subf %191, %195 : vector<256xf32>
    %c3_122 = arith.constant 3 : index
    %c0_123 = arith.constant 0 : index
    %197 = vector.load %arg8[%c3_122, %c0_123] : memref<8x256xf32, #tpu.memory_space<vmem>>, vector<1x256xf32>
    %198 = vector.shape_cast %197 : vector<1x256xf32> to vector<256xf32>
    %cst_124 = arith.constant 0.623208463 : f32
    %199 = vector.broadcast %cst_124 : f32 to vector<256xf32>
    %200 = arith.mulf %199, %198 : vector<256xf32>
    %201 = arith.subf %196, %200 : vector<256xf32>
    %c2_125 = arith.constant 2 : index
    %c0_126 = arith.constant 0 : index
    %202 = vector.load %arg8[%c2_125, %c0_126] : memref<8x256xf32, #tpu.memory_space<vmem>>, vector<1x256xf32>
    %203 = vector.shape_cast %202 : vector<1x256xf32> to vector<256xf32>
    %cst_127 = arith.constant 0.592465162 : f32
    %204 = vector.broadcast %cst_127 : f32 to vector<256xf32>
    %205 = arith.mulf %204, %203 : vector<256xf32>
    %206 = arith.subf %201, %205 : vector<256xf32>
    %c1_128 = arith.constant 1 : index
    %c0_129 = arith.constant 0 : index
    %207 = vector.load %arg8[%c1_128, %c0_129] : memref<8x256xf32, #tpu.memory_space<vmem>>, vector<1x256xf32>
    %208 = vector.shape_cast %207 : vector<1x256xf32> to vector<256xf32>
    %cst_130 = arith.constant 0.569064379 : f32
    %209 = vector.broadcast %cst_130 : f32 to vector<256xf32>
    %210 = arith.mulf %209, %208 : vector<256xf32>
    %211 = arith.subf %206, %210 : vector<256xf32>
    %c0_131 = arith.constant 0 : index
    %c0_132 = arith.constant 0 : index
    %212 = vector.load %arg8[%c0_131, %c0_132] : memref<8x256xf32, #tpu.memory_space<vmem>>, vector<1x256xf32>
    %213 = vector.shape_cast %212 : vector<1x256xf32> to vector<256xf32>
    %cst_133 = arith.constant 0.550313652 : f32
    %214 = vector.broadcast %cst_133 : f32 to vector<256xf32>
    %215 = arith.mulf %214, %213 : vector<256xf32>
    %216 = arith.subf %211, %215 : vector<256xf32>
    %cst_134 = arith.constant 0.970616817 : f32
    %217 = vector.broadcast %cst_134 : f32 to vector<256xf32>
    %218 = arith.mulf %217, %189 : vector<256xf32>
    %219 = arith.addf %218, %216 : vector<256xf32>
    %cst_135 = arith.constant -5.000000e+01 : f32
    %220 = vector.broadcast %cst_135 : f32 to vector<256xf32>
    %221 = arith.cmpf oge, %189, %220 : vector<256xf32>
    %cst_136 = arith.constant -7.000000e+01 : f32
    %222 = vector.broadcast %cst_136 : f32 to vector<256xf32>
    %223 = arith.select %221, %222, %219 : vector<256xi1>, vector<256xf32>
    %224 = arith.subf %223, %189 : vector<256xf32>
    %c5_137 = arith.constant 5 : index
    %c0_138 = arith.constant 0 : index
    %225 = vector.load %arg8[%c5_137, %c0_138] : memref<8x256xf32, #tpu.memory_space<vmem>>, vector<1x256xf32>
    %226 = vector.shape_cast %225 : vector<1x256xf32> to vector<256xf32>
    %227 = vector.shape_cast %224 : vector<256xf32> to vector<1x256xf32>
    tpu.vector_store %arg8[%c5_137, %c0_138], %227 {strides = array<i32>} : memref<8x256xf32, #tpu.memory_space<vmem>>, vector<1x256xf32>,
    %c0_139 = arith.constant 0 : index
    %c0_140 = arith.constant 0 : index
    %228 = vector.load %arg6[%c0_139, %c0_140] : memref<1x256xf32, #tpu.memory_space<vmem>>, vector<1x256xf32>
    %229 = vector.shape_cast %228 : vector<1x256xf32> to vector<256xf32>
    %230 = vector.shape_cast %223 : vector<256xf32> to vector<1x256xf32>
    tpu.vector_store %arg6[%c0_139, %c0_140], %230 {strides = array<i32>} : memref<1x256xf32, #tpu.memory_space<vmem>>, vector<1x256xf32>,
    %231 = arith.extui %221 : vector<256xi1> to vector<256xi32>
    %232 = arith.sitofp %231 : vector<256xi32> to vector<256xf32>
    %233 = arith.truncf %232 : vector<256xf32> to vector<256xbf16>
    %c0_141 = arith.constant 0 : index
    %c5_142 = arith.constant 5 : index
    %c0_143 = arith.constant 0 : index
    %234 = vector.load %arg4[%c0_141, %c5_142, %c0_143] : memref<1x8x256xbf16, #tpu.memory_space<vmem>>, vector<1x1x256xbf16>
    %235 = vector.shape_cast %234 : vector<1x1x256xbf16> to vector<256xbf16>
    %236 = vector.shape_cast %233 : vector<256xbf16> to vector<1x1x256xbf16>
    tpu.vector_store %arg4[%c0_141, %c5_142, %c0_143], %236 {strides = array<i32>} : memref<1x8x256xbf16, #tpu.memory_space<vmem>>, vector<1x1x256xbf16>,
    %c0_144 = arith.constant 0 : index
    %c5_145 = arith.constant 5 : index
    %c0_146 = arith.constant 0 : index
    %237 = vector.load %arg5[%c0_144, %c5_145, %c0_146] : memref<1x8x256xf32, #tpu.memory_space<vmem>>, vector<1x1x256xf32>
    %238 = vector.shape_cast %237 : vector<1x1x256xf32> to vector<256xf32>
    %239 = vector.shape_cast %223 : vector<256xf32> to vector<1x1x256xf32>
    tpu.vector_store %arg5[%c0_144, %c5_145, %c0_146], %239 {strides = array<i32>} : memref<1x8x256xf32, #tpu.memory_space<vmem>>, vector<1x1x256xf32>,
    %c0_147 = arith.constant 0 : index
    %c0_148 = arith.constant 0 : index
    %240 = vector.load %arg6[%c0_147, %c0_148] : memref<1x256xf32, #tpu.memory_space<vmem>>, vector<1x256xf32>
    %241 = vector.shape_cast %240 : vector<1x256xf32> to vector<256xf32>
    %c6 = arith.constant 6 : index
    %c0_149 = arith.constant 0 : index
    %242 = vector.load %arg9[%c6, %c0_149] : memref<8x256xf32, #tpu.memory_space<vmem>>, vector<1x256xf32>
    %243 = vector.shape_cast %242 : vector<1x256xf32> to vector<256xf32>
    %c5_150 = arith.constant 5 : index
    %c0_151 = arith.constant 0 : index
    %244 = vector.load %arg8[%c5_150, %c0_151] : memref<8x256xf32, #tpu.memory_space<vmem>>, vector<1x256xf32>
    %245 = vector.shape_cast %244 : vector<1x256xf32> to vector<256xf32>
    %cst_152 = arith.constant 0.667123556 : f32
    %246 = vector.broadcast %cst_152 : f32 to vector<256xf32>
    %247 = arith.mulf %246, %245 : vector<256xf32>
    %248 = arith.subf %243, %247 : vector<256xf32>
    %c4_153 = arith.constant 4 : index
    %c0_154 = arith.constant 0 : index
    %249 = vector.load %arg8[%c4_153, %c0_154] : memref<8x256xf32, #tpu.memory_space<vmem>>, vector<1x256xf32>
    %250 = vector.shape_cast %249 : vector<1x256xf32> to vector<256xf32>
    %cst_155 = arith.constant 0.623208463 : f32
    %251 = vector.broadcast %cst_155 : f32 to vector<256xf32>
    %252 = arith.mulf %251, %250 : vector<256xf32>
    %253 = arith.subf %248, %252 : vector<256xf32>
    %c3_156 = arith.constant 3 : index
    %c0_157 = arith.constant 0 : index
    %254 = vector.load %arg8[%c3_156, %c0_157] : memref<8x256xf32, #tpu.memory_space<vmem>>, vector<1x256xf32>
    %255 = vector.shape_cast %254 : vector<1x256xf32> to vector<256xf32>
    %cst_158 = arith.constant 0.592465162 : f32
    %256 = vector.broadcast %cst_158 : f32 to vector<256xf32>
    %257 = arith.mulf %256, %255 : vector<256xf32>
    %258 = arith.subf %253, %257 : vector<256xf32>
    %c2_159 = arith.constant 2 : index
    %c0_160 = arith.constant 0 : index
    %259 = vector.load %arg8[%c2_159, %c0_160] : memref<8x256xf32, #tpu.memory_space<vmem>>, vector<1x256xf32>
    %260 = vector.shape_cast %259 : vector<1x256xf32> to vector<256xf32>
    %cst_161 = arith.constant 0.569064379 : f32
    %261 = vector.broadcast %cst_161 : f32 to vector<256xf32>
    %262 = arith.mulf %261, %260 : vector<256xf32>
    %263 = arith.subf %258, %262 : vector<256xf32>
    %c1_162 = arith.constant 1 : index
    %c0_163 = arith.constant 0 : index
    %264 = vector.load %arg8[%c1_162, %c0_163] : memref<8x256xf32, #tpu.memory_space<vmem>>, vector<1x256xf32>
    %265 = vector.shape_cast %264 : vector<1x256xf32> to vector<256xf32>
    %cst_164 = arith.constant 0.550313652 : f32
    %266 = vector.broadcast %cst_164 : f32 to vector<256xf32>
    %267 = arith.mulf %266, %265 : vector<256xf32>
    %268 = arith.subf %263, %267 : vector<256xf32>
    %c0_165 = arith.constant 0 : index
    %c0_166 = arith.constant 0 : index
    %269 = vector.load %arg8[%c0_165, %c0_166] : memref<8x256xf32, #tpu.memory_space<vmem>>, vector<1x256xf32>
    %270 = vector.shape_cast %269 : vector<1x256xf32> to vector<256xf32>
    %cst_167 = arith.constant 0.53475523 : f32
    %271 = vector.broadcast %cst_167 : f32 to vector<256xf32>
    %272 = arith.mulf %271, %270 : vector<256xf32>
    %273 = arith.subf %268, %272 : vector<256xf32>
    %cst_168 = arith.constant 0.970616817 : f32
    %274 = vector.broadcast %cst_168 : f32 to vector<256xf32>
    %275 = arith.mulf %274, %241 : vector<256xf32>
    %276 = arith.addf %275, %273 : vector<256xf32>
    %cst_169 = arith.constant -5.000000e+01 : f32
    %277 = vector.broadcast %cst_169 : f32 to vector<256xf32>
    %278 = arith.cmpf oge, %241, %277 : vector<256xf32>
    %cst_170 = arith.constant -7.000000e+01 : f32
    %279 = vector.broadcast %cst_170 : f32 to vector<256xf32>
    %280 = arith.select %278, %279, %276 : vector<256xi1>, vector<256xf32>
    %281 = arith.subf %280, %241 : vector<256xf32>
    %c6_171 = arith.constant 6 : index
    %c0_172 = arith.constant 0 : index
    %282 = vector.load %arg8[%c6_171, %c0_172] : memref<8x256xf32, #tpu.memory_space<vmem>>, vector<1x256xf32>
    %283 = vector.shape_cast %282 : vector<1x256xf32> to vector<256xf32>
    %284 = vector.shape_cast %281 : vector<256xf32> to vector<1x256xf32>
    tpu.vector_store %arg8[%c6_171, %c0_172], %284 {strides = array<i32>} : memref<8x256xf32, #tpu.memory_space<vmem>>, vector<1x256xf32>,
    %c0_173 = arith.constant 0 : index
    %c0_174 = arith.constant 0 : index
    %285 = vector.load %arg6[%c0_173, %c0_174] : memref<1x256xf32, #tpu.memory_space<vmem>>, vector<1x256xf32>
    %286 = vector.shape_cast %285 : vector<1x256xf32> to vector<256xf32>
    %287 = vector.shape_cast %280 : vector<256xf32> to vector<1x256xf32>
    tpu.vector_store %arg6[%c0_173, %c0_174], %287 {strides = array<i32>} : memref<1x256xf32, #tpu.memory_space<vmem>>, vector<1x256xf32>,
    %288 = arith.extui %278 : vector<256xi1> to vector<256xi32>
    %289 = arith.sitofp %288 : vector<256xi32> to vector<256xf32>
    %290 = arith.truncf %289 : vector<256xf32> to vector<256xbf16>
    %c0_175 = arith.constant 0 : index
    %c6_176 = arith.constant 6 : index
    %c0_177 = arith.constant 0 : index
    %291 = vector.load %arg4[%c0_175, %c6_176, %c0_177] : memref<1x8x256xbf16, #tpu.memory_space<vmem>>, vector<1x1x256xbf16>
    %292 = vector.shape_cast %291 : vector<1x1x256xbf16> to vector<256xbf16>
    %293 = vector.shape_cast %290 : vector<256xbf16> to vector<1x1x256xbf16>
    tpu.vector_store %arg4[%c0_175, %c6_176, %c0_177], %293 {strides = array<i32>} : memref<1x8x256xbf16, #tpu.memory_space<vmem>>, vector<1x1x256xbf16>,
    %c0_178 = arith.constant 0 : index
    %c6_179 = arith.constant 6 : index
    %c0_180 = arith.constant 0 : index
    %294 = vector.load %arg5[%c0_178, %c6_179, %c0_180] : memref<1x8x256xf32, #tpu.memory_space<vmem>>, vector<1x1x256xf32>
    %295 = vector.shape_cast %294 : vector<1x1x256xf32> to vector<256xf32>
    %296 = vector.shape_cast %280 : vector<256xf32> to vector<1x1x256xf32>
    tpu.vector_store %arg5[%c0_178, %c6_179, %c0_180], %296 {strides = array<i32>} : memref<1x8x256xf32, #tpu.memory_space<vmem>>, vector<1x1x256xf32>,
    %c0_181 = arith.constant 0 : index
    %c0_182 = arith.constant 0 : index
    %297 = vector.load %arg6[%c0_181, %c0_182] : memref<1x256xf32, #tpu.memory_space<vmem>>, vector<1x256xf32>
    %298 = vector.shape_cast %297 : vector<1x256xf32> to vector<256xf32>
    %c7 = arith.constant 7 : index
    %c0_183 = arith.constant 0 : index
    %299 = vector.load %arg9[%c7, %c0_183] : memref<8x256xf32, #tpu.memory_space<vmem>>, vector<1x256xf32>
    %300 = vector.shape_cast %299 : vector<1x256xf32> to vector<256xf32>
    %c6_184 = arith.constant 6 : index
    %c0_185 = arith.constant 0 : index
    %301 = vector.load %arg8[%c6_184, %c0_185] : memref<8x256xf32, #tpu.memory_space<vmem>>, vector<1x256xf32>
    %302 = vector.shape_cast %301 : vector<1x256xf32> to vector<256xf32>
    %cst_186 = arith.constant 0.667123556 : f32
    %303 = vector.broadcast %cst_186 : f32 to vector<256xf32>
    %304 = arith.mulf %303, %302 : vector<256xf32>
    %305 = arith.subf %300, %304 : vector<256xf32>
    %c5_187 = arith.constant 5 : index
    %c0_188 = arith.constant 0 : index
    %306 = vector.load %arg8[%c5_187, %c0_188] : memref<8x256xf32, #tpu.memory_space<vmem>>, vector<1x256xf32>
    %307 = vector.shape_cast %306 : vector<1x256xf32> to vector<256xf32>
    %cst_189 = arith.constant 0.623208463 : f32
    %308 = vector.broadcast %cst_189 : f32 to vector<256xf32>
    %309 = arith.mulf %308, %307 : vector<256xf32>
    %310 = arith.subf %305, %309 : vector<256xf32>
    %c4_190 = arith.constant 4 : index
    %c0_191 = arith.constant 0 : index
    %311 = vector.load %arg8[%c4_190, %c0_191] : memref<8x256xf32, #tpu.memory_space<vmem>>, vector<1x256xf32>
    %312 = vector.shape_cast %311 : vector<1x256xf32> to vector<256xf32>
    %cst_192 = arith.constant 0.592465162 : f32
    %313 = vector.broadcast %cst_192 : f32 to vector<256xf32>
    %314 = arith.mulf %313, %312 : vector<256xf32>
    %315 = arith.subf %310, %314 : vector<256xf32>
    %c3_193 = arith.constant 3 : index
    %c0_194 = arith.constant 0 : index
    %316 = vector.load %arg8[%c3_193, %c0_194] : memref<8x256xf32, #tpu.memory_space<vmem>>, vector<1x256xf32>
    %317 = vector.shape_cast %316 : vector<1x256xf32> to vector<256xf32>
    %cst_195 = arith.constant 0.569064379 : f32
    %318 = vector.broadcast %cst_195 : f32 to vector<256xf32>
    %319 = arith.mulf %318, %317 : vector<256xf32>
    %320 = arith.subf %315, %319 : vector<256xf32>
    %c2_196 = arith.constant 2 : index
    %c0_197 = arith.constant 0 : index
    %321 = vector.load %arg8[%c2_196, %c0_197] : memref<8x256xf32, #tpu.memory_space<vmem>>, vector<1x256xf32>
    %322 = vector.shape_cast %321 : vector<1x256xf32> to vector<256xf32>
    %cst_198 = arith.constant 0.550313652 : f32
    %323 = vector.broadcast %cst_198 : f32 to vector<256xf32>
    %324 = arith.mulf %323, %322 : vector<256xf32>
    %325 = arith.subf %320, %324 : vector<256xf32>
    %c1_199 = arith.constant 1 : index
    %c0_200 = arith.constant 0 : index
    %326 = vector.load %arg8[%c1_199, %c0_200] : memref<8x256xf32, #tpu.memory_space<vmem>>, vector<1x256xf32>
    %327 = vector.shape_cast %326 : vector<1x256xf32> to vector<256xf32>
    %cst_201 = arith.constant 0.53475523 : f32
    %328 = vector.broadcast %cst_201 : f32 to vector<256xf32>
    %329 = arith.mulf %328, %327 : vector<256xf32>
    %330 = arith.subf %325, %329 : vector<256xf32>
    %c0_202 = arith.constant 0 : index
    %c0_203 = arith.constant 0 : index
    %331 = vector.load %arg8[%c0_202, %c0_203] : memref<8x256xf32, #tpu.memory_space<vmem>>, vector<1x256xf32>
    %332 = vector.shape_cast %331 : vector<1x256xf32> to vector<256xf32>
    %cst_204 = arith.constant 0.521514475 : f32
    %333 = vector.broadcast %cst_204 : f32 to vector<256xf32>
    %334 = arith.mulf %333, %332 : vector<256xf32>
    %335 = arith.subf %330, %334 : vector<256xf32>
    %cst_205 = arith.constant 0.970616817 : f32
    %336 = vector.broadcast %cst_205 : f32 to vector<256xf32>
    %337 = arith.mulf %336, %298 : vector<256xf32>
    %338 = arith.addf %337, %335 : vector<256xf32>
    %cst_206 = arith.constant -5.000000e+01 : f32
    %339 = vector.broadcast %cst_206 : f32 to vector<256xf32>
    %340 = arith.cmpf oge, %298, %339 : vector<256xf32>
    %cst_207 = arith.constant -7.000000e+01 : f32
    %341 = vector.broadcast %cst_207 : f32 to vector<256xf32>
    %342 = arith.select %340, %341, %338 : vector<256xi1>, vector<256xf32>
    %343 = arith.subf %342, %298 : vector<256xf32>
    %c7_208 = arith.constant 7 : index
    %c0_209 = arith.constant 0 : index
    %344 = vector.load %arg8[%c7_208, %c0_209] : memref<8x256xf32, #tpu.memory_space<vmem>>, vector<1x256xf32>
    %345 = vector.shape_cast %344 : vector<1x256xf32> to vector<256xf32>
    %346 = vector.shape_cast %343 : vector<256xf32> to vector<1x256xf32>
    tpu.vector_store %arg8[%c7_208, %c0_209], %346 {strides = array<i32>} : memref<8x256xf32, #tpu.memory_space<vmem>>, vector<1x256xf32>,
    %c0_210 = arith.constant 0 : index
    %c0_211 = arith.constant 0 : index
    %347 = vector.load %arg6[%c0_210, %c0_211] : memref<1x256xf32, #tpu.memory_space<vmem>>, vector<1x256xf32>
    %348 = vector.shape_cast %347 : vector<1x256xf32> to vector<256xf32>
    %349 = vector.shape_cast %342 : vector<256xf32> to vector<1x256xf32>
    tpu.vector_store %arg6[%c0_210, %c0_211], %349 {strides = array<i32>} : memref<1x256xf32, #tpu.memory_space<vmem>>, vector<1x256xf32>,
    %350 = arith.extui %340 : vector<256xi1> to vector<256xi32>
    %351 = arith.sitofp %350 : vector<256xi32> to vector<256xf32>
    %352 = arith.truncf %351 : vector<256xf32> to vector<256xbf16>
    %c0_212 = arith.constant 0 : index
    %c7_213 = arith.constant 7 : index
    %c0_214 = arith.constant 0 : index
    %353 = vector.load %arg4[%c0_212, %c7_213, %c0_214] : memref<1x8x256xbf16, #tpu.memory_space<vmem>>, vector<1x1x256xbf16>
    %354 = vector.shape_cast %353 : vector<1x1x256xbf16> to vector<256xbf16>
    %355 = vector.shape_cast %352 : vector<256xbf16> to vector<1x1x256xbf16>
    tpu.vector_store %arg4[%c0_212, %c7_213, %c0_214], %355 {strides = array<i32>} : memref<1x8x256xbf16, #tpu.memory_space<vmem>>, vector<1x1x256xbf16>,
    %c0_215 = arith.constant 0 : index
    %c7_216 = arith.constant 7 : index
    %c0_217 = arith.constant 0 : index
    %356 = vector.load %arg5[%c0_215, %c7_216, %c0_217] : memref<1x8x256xf32, #tpu.memory_space<vmem>>, vector<1x1x256xf32>
    %357 = vector.shape_cast %356 : vector<1x1x256xf32> to vector<256xf32>
    %358 = vector.shape_cast %342 : vector<256xf32> to vector<1x1x256xf32>
    tpu.vector_store %arg5[%c0_215, %c7_216, %c0_217], %358 {strides = array<i32>} : memref<1x8x256xf32, #tpu.memory_space<vmem>>, vector<1x1x256xf32>,
    %359 = tpu.assume_multiple %0, 8 : i32
    %c0_218 = arith.constant 0 : index
    %c0_219 = arith.constant 0 : index
    %360 = vector.load %arg8[%c0_218, %c0_219] : memref<8x256xf32, #tpu.memory_space<vmem>>, vector<8x256xf32>
    %361 = arith.index_cast %359 : i32 to index
    %c0_220 = arith.constant 0 : index
    %362 = vector.load %arg7[%361, %c0_220] : memref<16x256xf32, #tpu.memory_space<vmem>>, vector<8x256xf32>
    tpu.vector_store %arg7[%361, %c0_220], %360 {strides = array<i32>} : memref<16x256xf32, #tpu.memory_space<vmem>>, vector<8x256xf32>,
    return
  }
  func.func @transform_0(%arg0: i32, %arg1: i32) -> (i32, i32, i32, i32) {
    %c0_i32 = arith.constant 0 : i32
    %c0_i32_0 = arith.constant 0 : i32
    %c0_i32_1 = arith.constant 0 : i32
    %c0_i32_2 = arith.constant 0 : i32
    return %arg1, %c0_i32, %c0_i32_0, %c0_i32_1 : i32, i32, i32, i32
  }
  func.func @transform_1(%arg0: i32, %arg1: i32) -> (i32, i32, i32) {
    %c0_i32 = arith.constant 0 : i32
    %c0_i32_0 = arith.constant 0 : i32
    return %arg0, %arg1, %c0_i32 : i32, i32, i32
  }
  func.func @transform_2(%arg0: i32, %arg1: i32) -> (i32, i32, i32) {
    %c0_i32 = arith.constant 0 : i32
    %c0_i32_0 = arith.constant 0 : i32
    return %arg0, %arg1, %c0_i32 : i32, i32, i32
  }
  func.func @transform_3(%arg0: i32, %arg1: i32) -> (i32, i32, i32) {
    %c0_i32 = arith.constant 0 : i32
    %c0_i32_0 = arith.constant 0 : i32
    return %arg0, %arg1, %c0_i32 : i32, i32, i32
  }
}

</mosaic_0001>

<bundles_post_ra>
// kernel: tpu_custom_call.1
= control target key start
LH: loop header
LB: loop body
LE: loop exit
PB: predicated region body
PF: predicated region fallthrough
CT: control target
= control target key end

     0   :  { %s2045_s0 = inlined_call_operand.hbm [shape: f32[2,2,8,8], index: 0, kind: input, shape index: {}]   ;;  %s2046_s1 = inlined_call_operand.hbm [shape: f32[3,16,256], index: 1, kind: input, shape index: {}]   ;;  %s2047_s2 = inlined_call_operand.hbm [shape: bf16[3,16,256], index: 2, kind: output, shape index: {0}]   ;;  %s2048_s3 = inlined_call_operand.hbm [shape: f32[3,16,256], index: 3, kind: output, shape index: {1}]  }
   0x1   :  { %2054 = sst [smem:[#allocation24_spill]] %s2045_s0 }
   0x2   :  { %9 = vsyncpa [#allocation7], 0 }
   0x3   :  { %11 = vsyncpa [#allocation7 + $0x1], 0 }
   0x4   :  { %12 = vsyncpa [#allocation10], 0 }
   0x5   :  { %14 = vsyncpa [#allocation10 + $0x1], 0 }
   0x6   :  { %15 = vsyncpa [#allocation8], 0 }
   0x7   :  { %17 = vsyncpa [#allocation8 + $0x1], 0 }
   0x8   :  { %18 = vsyncpa [#allocation13], 0 }
   0x9   :  { %20 = vsyncpa [#allocation13 + $0x1], 0  ;;  %s1530_s12 = smov 0   ;;  %s1532_s13 = smov 0  }
   0xa   :  { %s1534_s14 = smov 0   ;;  %s1536_s15 = smov 0  }
   0xb   :  { %s1538_s16 = smov 0   ;;  %s1540_s17 = smov 0  }
   0xc   :  { %s1542_s18 = smov 0   ;;  %s1544_s19 = smov 0  }
   0xd   :  { %s1546_s20 = smov 0   ;;  %s1548_s21 = smov 0  }
   0xe   :  { %s1550_s22 = smov 0  }
   0xf LB: > { %2055 = sst [smem:[#allocation18_spill]] %s1473_s17  ;;  %s35_s23 = sadd.s32 1, %s1485_s20  ;;  %s1493_s22 = sphi %s1550_s22, %s26_s22   ;;  %s1489_s21 = sphi %s1548_s21, %s2100_s21   ;;  %s1485_s20 = sphi %s1546_s20, %s2107_s20   ;;  %s1481_s19 = sphi %s1544_s19, %s2098_s19   ;;  %s1477_s18 = sphi %s1542_s18, %s2106_s18   ;;  %s1473_s17 = sphi %s1540_s17, %s2097_s17   ;;  %s1469_s16 = sphi %s1538_s16, %s2105_s16   ;;  %s1465_s15 = sphi %s1536_s15, %s2104_s15   ;;  %s1461_s14 = sphi %s1534_s14, %s2103_s14   ;;  %s1457_s13 = sphi %s1532_s13, %s2102_s13   ;;  %s1453_s12 = sphi %s1530_s12, %s2101_s12  }
  0x10   : > { %2056 = sst [smem:[#allocation19_spill]] %s1489_s21  ;;  %s45_s24 = sadd.s32 1, %s1473_s17 }
  0x11   : > { %p52_p0 = scmp.ne.s32.totalorder %s1473_s17, %s1469_s16  ;;  %p53_p1 = scmp.eq.s32.totalorder %s1493_s22, 0 }
  0x12   : > { %p58_p2 = scmp.ne.s32.totalorder %s1469_s16, %s1465_s15  ;;  %p1174_p4 = scmp.lt.s32.totalorder %s1493_s22, 6 }
  0x13   : > { %p54_p3 = por %p53_p1, %p52_p0  ;;  %s166_s25 = sand.u32 1, %s1473_s17  }
  0x14   : > { %s1141_s26 = sshll.u32 %s1485_s20, 8  ;;  %s1085_s27 = sshll.u32 %s166_s25, 4 }
  0x15   : > { %s2057_s0 = sld [smem:[#allocation24_spill]]  ;;  %s170_s4 = scalar_lea.vmem [#allocation6], %s1085_s27 }
  0x16   : > { %s177_s5 = sshll.u32 %s170_s4, 4  ;;  %p1602_p5 = pnand %p1174_p4, %p54_p3  ;;  %s178_s5 = int_to_ptr.vmem [resolvable:$true] %s177_s5 }
  0x17   : > { %s167_s7 = scalar_lea.sflag [#allocation7], %s166_s25  ;;  %s1292_s8 = scalar_lea.vmem %s178_s5, 256 }
  0x18   : > { %p1281_p6 = pneg %p1602_p5  ;;  %p1293_p7 = scmp.ne.s32.totalorder %s178_s5, %s1292_s8 }
  0x19   : > { %s1499_s9 = smov [#allocation6]  }
  0x1a   : > { %p1295_p8 = pnand %p1293_p7, %p1281_p6  ;;  %s1297_s10 = sshll.u32 %s1499_s9, 4  ;;  %s1298_s10 = int_to_ptr.vmem [resolvable:$false] %s1297_s10 }
  0x1b   : > { %s176_s30 = scalar_lea.hbm %s2057_s0, %s1141_s26  ;;  %s1299_s11 = scalar_lea.vmem %s1298_s10, 512 }
  0x1c   : > { %p1296_p9 = pneg %p1295_p8  ;;  %p1300_p10 = scmp.lt.s32.totalorder %s178_s5, %s1298_s10 }
  0x1d   : > { %p1301_p11 = scmp.lt.s32.totalorder %s1299_s11, %s1292_s8 }
  0x1f   : > { %p1302_p12 = por %p1301_p11, %p1300_p10 }
  0x21   : > { %p1303_p13 = pnand %p1302_p12, %p1296_p9 }
  0x23   : > { %1306 = shalt.err (!%p1303_p13)
}
  0x24   : > { %s1500_s26 = smov 128   ;;  %s1501_s25 = smov 8  }
  0x25   : > { %1163 = dma.hbm_to_vmem [thread:$0]  (!%p1602_p5), %s176_s30, 256, %s178_s5, %s167_s7, %s1500_s26, %s1500_s26, %s1501_s25  }
  0x26   : > { %p1092_p0 = scmp.ge.s32.totalorder %s1493_s22, 1  ;;  %p206_p3 = scmp.lt.s32.totalorder %s1493_s22, 7 }
  0x27   : > { %s1081_s28 = sadd.s32 4294967295, %s1493_s22   ;;  %s1082_s29 = sadd.s32 4294967294, %s1493_s22  }
  0x28   : > { %p1612_p6 = pnand %p1092_p0, %p206_p3  ;;  %p36_p7 = scmp.ge.s32.totalorder %s35_s23, 2 }
  0x29   : > { %s38_s4 = sadd.s32 1, %s1489_s21  ;;  %p1621_p5 = scmp.eq.s32.totalorder %s1081_s28, 0 }
  0x2a   : > { %s2109_s23 = smov (%p36_p7, %s35_s23), 0  ;;  %s2111_s4 = smov (!%p36_p7, %s38_s4), %s1489_s21 }
  0x2b   : > { %2061 = sst [smem:[#allocation20_spill]] %s2109_s23  ;;  %s42_s5 = ssub.s32 %s1485_s20, %s2109_s23 }
  0x2c   : > { %p1637_p8 = por %p1621_p5, %p58_p2  ;;  %p40_p9 = scmp.ge.s32.totalorder %s2111_s4, 3 }
  0x2d   : > { %p43_p10 = scmp.eq.s32.totalorder %s42_s5, 0  ;;  %s73_s7 = sadd.s32 1, %s1461_s14 }
  0x2e   : > { %p80_p11 = scmp.ne.s32.totalorder %s1461_s14, %s1457_s13  ;;  %s2113_s4 = smov (%p40_p9, %s2111_s4), 0 }
  0x2f   : > { %2063 = sst [smem:[#allocation21_spill]] %s2113_s4  ;;  %s68_s15 = ssub.s32 %s1489_s21, %s2113_s4 }
  0x30   : > { %s1649_s8 = scalar_select %p43_p10, %s1473_s17, %s45_s24  }
  0x31   : > { %p1655_p12 = por %p80_p11, %p53_p1  ;;  %s70_s10 = sor.u32 %s68_s15, %s42_s5 }
  0x32   : > { %2064 = sst [smem:[#allocation22_spill]] %s1649_s8  ;;  %p86_p2 = scmp.ne.s32.totalorder %s1457_s13, %s1453_s12 }
  0x33   : > { %p71_p13 = scmp.eq.s32.totalorder %s70_s10, 0  ;;  %p112_p0 = scmp.eq.s32.totalorder %s1081_s28, 5 }
  0x34   : > { %p1663_p3 = por %p86_p2, %p1621_p5  ;;  %p118_p7 = scmp.eq.s32.totalorder %s1082_s29, 5 }
  0x35   : > { %s1668_s24 = scalar_select %p71_p13, %s1461_s14, %s73_s7  }
  0x36   : > { %p1670_p9 = por %p112_p0, %p80_p11  ;;  %p1674_p1 = por %p118_p7, %p86_p2 }
  0x37   : > { %2067 = sst [smem:[#allocation23_spill]] %s1668_s24  ;;  %s187_s5 = sand.u32 1, %s1461_s14  }
  0x38   : > { %s2068_s26 = scalar_select %p1670_p9, 1, 0 }
  0x39   : > { %s2069_s25 = scalar_select %p1674_p1, 1, 0 }
  0x3a   : > { %s1089_s28 = sshll.u32 %s1485_s20, 1  ;;  %s1088_s30 = sshll.u32 %s187_s5, 4 }
  0x3b   : > { %s1090_s15 = sshll.u32 %s1489_s21, 2  ;;  %s191_s0 = scalar_lea.vmem [#allocation9], %s1088_s30 }
  0x3c   : > { %s197_s10 = sadd.s32 %s1090_s15, %s1089_s28  ;;  %s201_s4 = sshll.u32 %s191_s0, 4  ;;  %s202_s4 = int_to_ptr.vmem [resolvable:$true] %s201_s4 }
  0x3d   : > { %s1091_s23 = sshll.u32 %s197_s10, 7  ;;  %p1688_p5 = pnand %p1174_p4, %p1655_p12 }
  0x3e   : > { %s199_s8 = scalar_lea.hbm %s2046_s1, %s1091_s23  ;;  %s188_s24 = scalar_lea.sflag [#allocation10], %s187_s5 }
  0x3f   : > { %p1309_p10 = pneg %p1688_p5  ;;  %s1320_s21 = scalar_lea.vmem %s202_s4, 256 }
  0x40   : > { %p1321_p11 = scmp.ne.s32.totalorder %s202_s4, %s1320_s21  ;;  %s1502_s0 = smov [#allocation9]  }
  0x41   : > { %s1325_s28 = sshll.u32 %s1502_s0, 4  ;;  %s1326_s28 = int_to_ptr.vmem [resolvable:$false] %s1325_s28 }
  0x42   : > { %p1323_p2 = pnand %p1321_p11, %p1309_p10  ;;  %s1327_s30 = scalar_lea.vmem %s1326_s28, 512 }
  0x43   : > { %p1328_p0 = scmp.lt.s32.totalorder %s202_s4, %s1326_s28  ;;  %p1329_p7 = scmp.lt.s32.totalorder %s1327_s30, %s1320_s21 }
  0x44   : > { %p1324_p13 = pneg %p1323_p2 }
  0x45   : > { %p1330_p1 = por %p1329_p7, %p1328_p0 }
  0x47   : > { %p1331_p9 = pnand %p1330_p1, %p1324_p13 }
  0x49   : > { %1334 = shalt.err (!%p1331_p9)
}
  0x4a   : > { %1166 = dma.hbm_to_vmem [thread:$0]  (!%p1688_p5), %s199_s8, 256, %s202_s4, %s188_s24  }
  0x4b   : > { %210 = sbr.rel (%p1612_p6) target bundleno = 525 (0x20d), region = 28  ;;  %s212_s23 = sand.u32 (!%p1612_p6), 1, %s1469_s16  }
  0x4c   : > { %s1699_s9 = sshll.u32 (!%p1612_p6), %s212_s23, 4  ;;  %s213_s5 = scalar_lea.sflag (!%p1612_p6), [#allocation7], %s212_s23 }
  0x4d   : > { %s216_s15 = scalar_lea.vmem (!%p1612_p6), [#allocation6], %s1699_s9 }
  0x50   : > { %1436 = dma.done.wait (%p1637_p8), %s213_s5, 256  }
  0x51   : > { %1438 = vsyncadd (%p1637_p8), %s213_s5, 4294967040  ;;  %s1707_s17 = sand.u32 1, %s1457_s13  }
  0x52   : > { %s1094_s21 = sshll.u32 %s1707_s17, 4  ;;  %s222_s27 = scalar_lea.sflag [#allocation10], %s1707_s17 }
  0x53   : > { %s1711_s4 = scalar_lea.vmem [#allocation9], %s1094_s21 }
  0x54   : > { %1440 = dma.done.wait (%p1663_p3), %s222_s27, 256  }
  0x55   : > { %1442 = vsyncadd (%p1663_p3), %s222_s27, 4294967040  ;;  %s1095_s8 = sshll.u32 %s1707_s17, 3  ;;  %s1097_s6 = sshll.u32 %s1477_s18, 3  ;;  %v1503_v0 = vmov 0.0  }
  0x56   : > { %260 = vst [vmem:[#allocation5] sm:$0xff] %v1503_v0  ;;  %261 = vst [vmem:[#allocation5 + $0x8] sm:$0xff] %v1503_v0  ;;  %s1721_s24 = scalar_lea.vmem [#allocation11], %s1095_s8  ;;  %s1723_s10 = scalar_lea.vmem [#allocation12], %s1094_s21 }
  0x57   : > { %p1098_p4 = scmp.le.s32.totalorder %s1477_s18, 0 }
  0x58   : > { %s1728_s11 = smov (!%p1098_p4), 0  }
  0x59   : > { %1025 = sbr.rel (%p1098_p4) target bundleno = 299 (0x12b), region = 137 }
  0x5e LB: >> { %v1504_v1 = vmov 0.0   ;;  %s1099_s29 = sshll.u32 %s1497_s11, 3  ;;  %vm280_vm0 = vcmask 64512   ;;  %v278_v5 = vld [vmem:[#allocation5] sm:$0xff]  ;;  %v279_v7 = vld [vmem:[#allocation5 + $0x8] sm:$0xff]  ;;  %s265_s11 = sadd.s32 1, %s1497_s11   ;;  %s1497_s11 = sphi %s1728_s11, %s265_s11  }
  0x5f   : >> { %348 = vmatprep.mubr.f32.mxu0 %v1504_v1  ;;  %s269_s7 = scalar_lea.vmem %s216_s15, %s1099_s29 [#allocation6]  ;;  %s271_s0 = sshra.s32 %s1099_s29, 3 }
  0x60   : >> { %s1142_s28 = sshll.u32 %s271_s0, 4  ;;  %v270_v4 = vld [vmem:[%s269_s7] sm:$0xff]  ;;  %p264_p6 = scmp.ge.s32.totalorder %s265_s11, %s1477_s18 }
  0x61   : >> { %s275_s30 = scalar_lea.vmem [#allocation3], %s1142_s28 }
  0x62   : >> { %v277_v2 = vld [vmem:[%s275_s30 + $0x8] sm:$0xff]  ;;  %v276_v3 = vld [vmem:[%s275_s30] sm:$0xff] }
  0x63   : >> { %314 = vmatprep.subr.mxu0 %v277_v2 }
  0x64   : >> { %315 = vmatpush1.msra.mxu0 %v276_v3 }
  0x65   : >> { %1102 = vmatmul.mubr.msk.f32.vlgmr.msra.gmra.mxu0 %vm280_vm0, %v270_v4 }
 0x125   : >> { %v350_v6 = vpop.f32.mrf.mxu0 }
 0x126   : >> { %v355_v8 = vadd.f32 %v350_v6, %v278_v5  ;;  %267 = sbr.rel (!%p264_p6) target bundleno = 94 (0x5e), region = 143 }
 0x127   : >> { %v352_v9 = vpop.f32.mrf.mxu0 }
 0x128   : >> { %357 = vst [vmem:[#allocation5] sm:$0xff] %v355_v8  ;;  %v356_v10 = vadd.f32 %v352_v9, %v279_v7 }
 0x12a   : >> { %358 = vst [vmem:[#allocation5 + $0x8] sm:$0xff] %v356_v10 }
 0x12b PF: > { %v359_v11 = vld [vmem:[%s1711_s4] sm:$0xff]  ;;  %v360_v12 = vld [vmem:[%s1711_s4 + $0x8] sm:$0xff]  ;;  %p1103_p8 = scmp.ne.s32.totalorder %s1477_s18, 0 }
 0x12c   : > { %v361_v13 = vmul.f32 1.1753268, %v359_v11  ;;  %v362_v14 = vmul.f32 1.1753268, %v360_v12 }
 0x12e   : > { %v363_v17 = vadd.f32 -2.056822, %v361_v13  ;;  %v364_v18 = vadd.f32 -2.056822, %v362_v14 }
 0x12f   : > { %v365_v15 = vld [vmem:[#allocation5] sm:$0xff] }
 0x130   : > { %v367_v19 = vsub.f32 %v363_v17, %v365_v15  ;;  %374 = sbr.rel (%p1103_p8) target bundleno = 316 (0x13c), region = 47 }
 0x131   : > { %v366_v16 = vld [vmem:[#allocation5 + $0x8] sm:$0xff] }
 0x132   : > { %v368_v20 = vsub.f32 %v364_v18, %v366_v16  ;;  %369 = vst [vmem:[#allocation5] sm:$0xff] %v367_v19 }
 0x134   : > { %370 = vst [vmem:[#allocation5 + $0x8] sm:$0xff] %v368_v20 }
 0x135   : > { %v375_v21 = vlaneseq  ;;  %vm382_vm1 = vcmask 1040384   ;;  %vm383_vm2 = vsmask.f32 256  ;;  %vm385_vm3 = vcmask 1044484   ;;  %v389_v22 = vld [vmem:[%s1721_s24] sm:$0x11] }
 0x136   : > { %vm386_vm4 = vsmask.f32 4352  ;;  %vm384_vm6 = vmand %vm382_vm1, %vm383_vm2  ;;  %v1505_v23 = vmov -70.0   ;;  %v1506_v24 = vmov 0.0  }
 0x137   : > { %vm377_vm5 = vcmp.lt.s32.totalorder %v375_v21, 256  ;;  %vm387_vm7 = vmand %vm385_vm3, %vm386_vm4 }
 0x138   : > { %379 = vst.msk [vmem:[#allocation2] sm:$0x3] %vm377_vm5, %v1505_v23  ;;  %392 = vst.msk [vmem:[%s1723_s10] ss:$8 sm:$0x3] %vm377_vm5, %v1505_v23 }
 0x139   : > { %380 = vst.msk [vmem:[#allocation4] ss:$8 sm:$0x3] %vm377_vm5, %v1506_v24  ;;  %vm388_vm8 = vmor %vm387_vm7, %vm384_vm6 }
 0x13a   : > { %v390_v25 = vsel %vm388_vm8, 0, %v389_v22 }
 0x13b   : > { %391 = vst [vmem:[%s1721_s24] sm:$0x11] %v390_v25 }
 0x13c PF: > { %397 = sbr.rel (%p1098_p4) target bundleno = 333 (0x14d), region = 51 }
 0x141   : > { %v398_v26 = vld [vmem:[#allocation2] sm:$0x3]  ;;  %v405_v28 = vlaneseq  ;;  %vm433_vm10 = vcmask 1040384   ;;  %vm434_vm11 = vsmask.f32 256  ;;  %vm436_vm12 = vcmask 1044484  }
 0x142   : > { %v399_v27 = vld [vmem:[#allocation5] ss:$8 sm:$0x3]  ;;  %v400_v29 = vmul.f32 0.9706168, %v398_v26  ;;  %vm402_vm9 = vcmp.ge.f32.partialorder %v398_v26, -50.0  ;;  %vm1748_vm14 = vmand %vm433_vm10, %vm434_vm11 }
 0x143   : > { %v416_v30 = vshrl.u32 %v405_v28, 7  ;;  %vm1744_vm13 = vcmp.lt.s32.totalorder %v405_v28, 256  ;;  %v1507_v33 = vmov 0.0   ;;  %vm437_vm15 = vsmask.f32 4352 }
 0x144   : > { %v401_v31 = vadd.f32 %v400_v29, %v399_v27  ;;  %v1105_v34 = vsel %vm402_vm9, 1.0, %v1507_v33  ;;  %vm438_vm0 = vmand %vm436_vm12, %vm437_vm15  ;;  %v440_v42 = vld [vmem:[%s1721_s24] sm:$0x11] }
 0x145   : > { %v417_v36 = vsub.s32 0, %v416_v30  ;;  %v421_v37 = vsub.s32 1, %v416_v30  ;;  %vm439_vm1 = vmor %vm438_vm0, %vm1748_vm14 }
 0x146   : > { %v403_v38 = vsel %vm402_vm9, -70.0, %v401_v31 }
 0x147   : > { %v404_v39 = vsub.f32 %v403_v38, %v398_v26  ;;  %v418_v40 = vrot.slane %v1105_v34, %v417_v36  ;;  %v422_v41 = vrot.slane %v1105_v34, %v421_v37  ;;  %411 = vst.msk [vmem:[#allocation2] sm:$0x3] %vm1744_vm13, %v403_v38  ;;  %443 = vst.msk [vmem:[%s1723_s10] ss:$8 sm:$0x3] %vm1744_vm13, %v403_v38 }
 0x149   : > { %409 = vst.msk [vmem:[#allocation4] ss:$8 sm:$0x3] %vm1744_vm13, %v404_v39  ;;  %v1143_v43 = vpack.c.bf16 %v422_v41, %v418_v40 }
 0x14b   : > { %v441_v44 = vsel %vm439_vm1, %v1143_v43, %v440_v42 }
 0x14c   : > { %442 = vst [vmem:[%s1721_s24] sm:$0x11] %v441_v44 }
 0x14d PF: > { %s445_s23 = sadd.s32 1, %s1097_s6  ;;  %v1107_v51 = vld [vmem:[%s1711_s4 + $0x1] ss:$8 sm:$0x3]  ;;  %v467_v55 = vlaneseq  ;;  %vm552_vm5 = vcmask 1041409   ;;  %vm555_vm7 = vcmask 1045509  }
 0x14e   : > { %v446_v45 = vld [vmem:[#allocation2] sm:$0x3]  ;;  %v448_v46 = vld [vmem:[#allocation5 + $0x1] ss:$8 sm:$0x3]  ;;  %p459_p12 = scmp.eq.s32.totalorder %s445_s23, 1 }
 0x14f   : > { %v452_v49 = vmul.f32 0.9706168, %v446_v45  ;;  %v454_v50 = vmul.f32 0.995, %v446_v45  ;;  %v457_v53 = vmul.f32 0.2, %v1107_v51 }
 0x150   : > { %v449_v47 = vld [vmem:[#allocation4] ss:$8 sm:$0x3]  ;;  %s460_s9 = scalar_select %p459_p12, 1, 0  ;;  %vm464_vm3 = vcmp.ge.f32.partialorder %v446_v45, -50.0 }
 0x151   : > { %v450_v48 = vmul.f32 0.66712356, %v449_v47  ;;  %v458_v57 = vadd.f32 %v457_v53, %v454_v50  ;;  %vm1767_vm4 = vcmp.lt.s32.totalorder %v467_v55, 256  ;;  %v479_v62 = vshrl.u32 %v467_v55, 7  ;;  %v559_v16 = vld [vmem:[%s1721_s24] sm:$0x22] }
 0x152   : > { %v461_v54 = vstv %s460_s9  ;;  %v518_v63 = vld [vmem:[#allocation4] ss:$8 sm:$0x3]  ;;  %vm553_vm6 = vsmask.f32 1280  ;;  %v1108_v12 = vsel %vm464_vm3, 1.0, %v1503_v0 }
 0x153   : > { %v451_v52 = vsub.f32 %v448_v46, %v450_v48  ;;  %vm462_vm2 = vcmp.eq.s32.totalorder %v461_v54, 1  ;;  %v1778_v1 = vsub.s32 0, %v479_v62  ;;  %v1780_v2 = vsub.s32 1, %v479_v62  ;;  %v514_v4 = vld [vmem:[#allocation5 + $0x2] ss:$8 sm:$0x3]  ;;  %vm1785_vm10 = vmand %vm552_vm5, %vm553_vm6 }
 0x154   : > { %vm556_vm8 = vsmask.f32 5376  ;;  %v519_v9 = vmul.f32 0.62320846, %v518_v63  ;;  %vm499_vm13 = vcmask 1040384   ;;  %vm502_vm0 = vcmask 1044484  }
 0x155   : > { %v453_v56 = vadd.f32 %v452_v49, %v451_v52  ;;  %vm557_vm11 = vmand %vm555_vm7, %vm556_vm8  ;;  %v481_v17 = vrot.slane %v1108_v12, %v1778_v1  ;;  %v485_v18 = vrot.slane %v1108_v12, %v1780_v2  ;;  %vm500_vm14 = vsmask.f32 7938  ;;  %v506_v26 = vld [vmem:[%s1721_s24] sm:$0x11]  ;;  %s1133_s5 = sshll.u32 %s1477_s18, 1  ;;  %s1134_s15 = sshll.u32 %s1481_s19, 2 }
 0x156   : > { %vm558_vm12 = vmor %vm557_vm11, %vm1785_vm10  ;;  %vm503_vm1 = vsmask.f32 7954  ;;  %v567_v30 = vld [vmem:[#allocation5 + $0x3] ss:$8 sm:$0x3]  ;;  %s1919_s21 = sadd.s32 %s1134_s15, %s1133_s5  ;;  %s909_s27 = sshll.u32 %s1721_s24, 4  ;;  %s1938_s27 = int_to_ptr.vmem [resolvable:$true] %s909_s27 }
 0x157   : > { %v463_v58 = vsel %vm462_vm2, %v458_v57, %v453_v56  ;;  %v1144_v24 = vpack.c.bf16 %v485_v18, %v481_v17  ;;  %vm501_vm15 = vmand %vm499_vm13, %vm500_vm14  ;;  %v574_v31 = vld [vmem:[#allocation4] ss:$8 sm:$0x3]  ;;  %vm611_vm6 = vsmask.f32 7942  ;;  %vm671_vm13 = vcmask 1046534  }
 0x158   : > { %v465_v59 = vsel %vm464_vm3, -70.0, %v463_v58  ;;  %vm504_vm2 = vmand %vm502_vm0, %vm503_vm1  ;;  %v575_v41 = vmul.f32 0.59246516, %v574_v31  ;;  %v624_v53 = vld [vmem:[#allocation5 + $0x4] ss:$8 sm:$0x3] }
 0x159   : > { %v466_v61 = vsub.f32 %v465_v59, %v446_v45  ;;  %474 = vst.msk [vmem:[#allocation2] sm:$0x3] %vm1767_vm4, %v465_v59  ;;  %1110 = vst.msk [vmem:[%s1723_s10 + $0x1] ss:$8 sm:$0x3] %vm1767_vm4, %v465_v59  ;;  %v496_v27 = vshll.u32 %v1144_v24, 16 }
 0x15a   : > { %vm505_vm3 = vmor %vm504_vm2, %vm501_vm15  ;;  %vm672_vm14 = vsmask.f32 6400  ;;  %v634_v63 = vld [vmem:[#allocation4] ss:$8 sm:$0x3]  ;;  %s1135_s19 = sshll.u32 %s1919_s21, 6 }
 0x15b   : > { %472 = vst.msk [vmem:[#allocation4 + $0x1] ss:$8 sm:$0x3] %vm1767_vm4, %v466_v61  ;;  %v507_v28 = vsel %vm505_vm3, %v496_v27, %v506_v26  ;;  %vm612_vm10 = vmand %vm552_vm5, %vm611_vm6  ;;  %vm668_vm5 = vcmask 1042434   ;;  %vm733_vm3 = vsmask.f32 7946  ;;  %s1936_s11 = scalar_lea.hbm %s2047_s2, %s1135_s19 }
 0x15c   : > { %508 = vst [vmem:[%s1721_s24] sm:$0x11] %v507_v28  ;;  %vm673_vm1 = vmand %vm671_vm13, %vm672_vm14  ;;  %s888_s29 = scalar_lea.sflag [#allocation8], %s1707_s17  ;;  %s1335_s7 = scalar_lea.vmem %s1938_s27, 128 }
 0x15d   : > { %p1336_p3 = scmp.ne.s32.totalorder %s1938_s27, %s1335_s7  ;;  %p2093_p9 = scmp.ne.s32.totalorder %s2068_s26, 0 }
 0x15e   : > { %s1508_s0 = smov [#allocation11]  }
 0x15f   : > { %p1337_p1 = pnand %p1336_p3, %p2093_p9  ;;  %s1339_s28 = sshll.u32 %s1508_s0, 4  ;;  %s1340_s28 = int_to_ptr.vmem [resolvable:$false] %s1339_s28 }
 0x160   : > { %v512_v3 = vld [vmem:[#allocation2] sm:$0x3]  ;;  %s1341_s30 = scalar_lea.vmem %s1340_s28, 256  ;;  %p1342_p10 = scmp.lt.s32.totalorder %s1938_s27, %s1340_s28 }
 0x161   : > { %vm523_vm9 = vcmp.ge.f32.partialorder %v512_v3, -50.0  ;;  %v521_v14 = vmul.f32 0.9706168, %v512_v3  ;;  %p1338_p5 = pneg %p1337_p1  ;;  %p1343_p11 = scmp.lt.s32.totalorder %s1341_s30, %s1335_s7 }
 0x162   : > { %v515_v5 = vld [vmem:[#allocation4 + $0x1] ss:$8 sm:$0x3]  ;;  %v1111_v6 = vsel %vm523_vm9, 1.0, %v1503_v0 }
 0x163   : > { %v516_v8 = vmul.f32 0.66712356, %v515_v5  ;;  %v536_v10 = vrot.slane %v1111_v6, %v1778_v1  ;;  %v540_v11 = vrot.slane %v1111_v6, %v1780_v2  ;;  %v571_v32 = vld [vmem:[#allocation4 + $0x1] ss:$8 sm:$0x3]  ;;  %p1344_p2 = por %p1343_p11, %p1342_p10 }
 0x164   : > { %v572_v40 = vmul.f32 0.62320846, %v571_v32  ;;  %v631_v62 = vld [vmem:[#allocation4 + $0x1] ss:$8 sm:$0x3] }
 0x165   : > { %v517_v13 = vsub.f32 %v514_v4, %v516_v8  ;;  %v1145_v15 = vpack.c.bf16 %v540_v11, %v536_v10  ;;  %v675_v6 = vld [vmem:[%s1721_s24] sm:$0x44]  ;;  %v632_v8 = vmul.f32 0.59246516, %v631_v62  ;;  %p1345_p13 = pnand %p1344_p2, %p1338_p5 }
 0x166   : > { %v693_v32 = vld [vmem:[#allocation4 + $0x1] ss:$8 sm:$0x3] }
 0x167   : > { %v520_v19 = vsub.f32 %v517_v13, %v519_v9  ;;  %v550_v20 = vrot.slane %v1145_v15, 7  ;;  %v635_v9 = vmul.f32 0.5690644, %v634_v63 }
 0x169   : > { %v522_v21 = vadd.f32 %v521_v14, %v520_v19  ;;  %v560_v22 = vsel %vm558_vm12, %v550_v20, %v559_v16  ;;  %v683_v19 = vld [vmem:[#allocation5 + $0x5] ss:$8 sm:$0x3] }
 0x16a   : > { %561 = vst [vmem:[%s1721_s24] sm:$0x22] %v560_v22 }
 0x16b   : > { %v524_v23 = vsel %vm523_vm9, -70.0, %v522_v21  ;;  %vm613_vm9 = vsmask.f32 7958 }
 0x16c   : > { %529 = vst.msk [vmem:[#allocation2] sm:$0x3] %vm1767_vm4, %v524_v23  ;;  %1113 = vst.msk [vmem:[%s1723_s10 + $0x2] ss:$8 sm:$0x3] %vm1767_vm4, %v524_v23  ;;  %v525_v25 = vsub.f32 %v524_v23, %v512_v3 }
 0x16d   : > { %vm614_vm11 = vmand %vm555_vm7, %vm613_vm9  ;;  %vm669_vm7 = vsmask.f32 2304 }
 0x16e   : > { %527 = vst.msk [vmem:[#allocation4 + $0x2] ss:$8 sm:$0x3] %vm1767_vm4, %v525_v25  ;;  %vm615_vm12 = vmor %vm614_vm11, %vm612_vm10 }
 0x16f   : > { %vm1829_vm0 = vmand %vm668_vm5, %vm669_vm7  ;;  %vm799_vm7 = vcmask 1047559  }
 0x170   : > { %vm674_vm2 = vmor %vm673_vm1, %vm1829_vm0 }
 0x171   : > { %v616_v47 = vld [vmem:[%s1721_s24] sm:$0x22]  ;;  %vm1853_vm9 = vmand %vm668_vm5, %vm733_vm3  ;;  %vm797_vm5 = vsmask.f32 3328 }
 0x173   : > { %v565_v29 = vld [vmem:[#allocation2] sm:$0x3] }
 0x174   : > { %vm579_vm8 = vcmp.ge.f32.partialorder %v565_v29, -50.0  ;;  %v577_v46 = vmul.f32 0.9706168, %v565_v29 }
 0x175   : > { %v1114_v33 = vsel %vm579_vm8, 1.0, %v1503_v0  ;;  %v568_v34 = vld [vmem:[#allocation4 + $0x2] ss:$8 sm:$0x3] }
 0x176   : > { %v592_v35 = vrot.slane %v1114_v33, %v1778_v1  ;;  %v596_v36 = vrot.slane %v1114_v33, %v1780_v2  ;;  %v569_v37 = vmul.f32 0.66712356, %v568_v34  ;;  %v628_v54 = vld [vmem:[#allocation4 + $0x2] ss:$8 sm:$0x3] }
 0x177   : > { %v629_v4 = vmul.f32 0.62320846, %v628_v54  ;;  %v690_v27 = vld [vmem:[#allocation4 + $0x2] ss:$8 sm:$0x3] }
 0x178   : > { %v1146_v38 = vpack.c.bf16 %v596_v36, %v592_v35  ;;  %v570_v39 = vsub.f32 %v567_v30, %v569_v37  ;;  %v696_v33 = vld [vmem:[#allocation4] ss:$8 sm:$0x3]  ;;  %v691_v35 = vmul.f32 0.59246516, %v690_v27 }
 0x17a   : > { %v607_v42 = vshll.u32 %v1146_v38, 16  ;;  %v573_v43 = vsub.f32 %v570_v39, %v572_v40  ;;  %v694_v38 = vmul.f32 0.5690644, %v693_v32  ;;  %v697_v39 = vmul.f32 0.55031365, %v696_v33 }
 0x17c   : > { %v609_v44 = vrot.slane %v607_v42, 7  ;;  %v576_v45 = vsub.f32 %v573_v43, %v575_v41 }
 0x17e   : > { %v617_v48 = vsel %vm615_vm12, %v609_v44, %v616_v47  ;;  %v578_v49 = vadd.f32 %v577_v46, %v576_v45  ;;  %vm796_vm12 = vcmask 1043459  }
 0x17f   : > { %618 = vst [vmem:[%s1721_s24] sm:$0x22] %v617_v48 }
 0x180   : > { %v580_v50 = vsel %vm579_vm8, -70.0, %v578_v49  ;;  %vm735_vm8 = vsmask.f32 7962 }
 0x181   : > { %585 = vst.msk [vmem:[#allocation2] sm:$0x3] %vm1767_vm4, %v580_v50  ;;  %1116 = vst.msk [vmem:[%s1723_s10 + $0x3] ss:$8 sm:$0x3] %vm1767_vm4, %v580_v50  ;;  %v581_v51 = vsub.f32 %v580_v50, %v565_v29 }
 0x182   : > { %vm1858_vm10 = vmand %vm671_vm13, %vm735_vm8  ;;  %v746_v50 = vld [vmem:[#allocation5 + $0x6] ss:$8 sm:$0x3]  ;;  %vm800_vm13 = vsmask.f32 7424 }
 0x183   : > { %583 = vst.msk [vmem:[#allocation4 + $0x3] ss:$8 sm:$0x3] %vm1767_vm4, %v581_v51  ;;  %vm737_vm11 = vmor %vm1858_vm10, %vm1853_vm9 }
 0x184   : > { %vm1886_vm0 = vmand %vm799_vm7, %vm800_vm13 }
 0x188   : > { %v622_v52 = vld [vmem:[#allocation2] sm:$0x3] }
 0x189   : > { %vm639_vm15 = vcmp.ge.f32.partialorder %v622_v52, -50.0  ;;  %v637_v14 = vmul.f32 0.9706168, %v622_v52 }
 0x18a   : > { %v625_v55 = vld [vmem:[#allocation4 + $0x3] ss:$8 sm:$0x3]  ;;  %v1117_v56 = vsel %vm639_vm15, 1.0, %v1503_v0 }
 0x18b   : > { %v626_v58 = vmul.f32 0.66712356, %v625_v55  ;;  %v652_v59 = vrot.slane %v1117_v56, %v1778_v1  ;;  %v656_v61 = vrot.slane %v1117_v56, %v1780_v2  ;;  %v687_v20 = vld [vmem:[#allocation4 + $0x3] ss:$8 sm:$0x3] }
 0x18c   : > { %v688_v30 = vmul.f32 0.62320846, %v687_v20 }
 0x18d   : > { %v627_v3 = vsub.f32 %v624_v53, %v626_v58  ;;  %v1147_v5 = vpack.c.bf16 %v656_v61, %v652_v59  ;;  %v753_v59 = vld [vmem:[#allocation4 + $0x3] ss:$8 sm:$0x3] }
 0x18f   : > { %v630_v7 = vsub.f32 %v627_v3, %v629_v4  ;;  %v666_v10 = vrot.slane %v1147_v5, 6  ;;  %v756_v3 = vld [vmem:[#allocation4 + $0x2] ss:$8 sm:$0x3]  ;;  %v803_v4 = vld [vmem:[%s1721_s24] sm:$0x88] }
 0x191   : > { %v633_v11 = vsub.f32 %v630_v7, %v632_v8  ;;  %v676_v12 = vsel %vm674_vm2, %v666_v10, %v675_v6  ;;  %v754_v6 = vmul.f32 0.59246516, %v753_v59  ;;  %v759_v8 = vld [vmem:[#allocation4 + $0x1] ss:$8 sm:$0x3] }
 0x192   : > { %677 = vst [vmem:[%s1721_s24] sm:$0x44] %v676_v12  ;;  %vm867_vm2 = vsmask.f32 7950 }
 0x193   : > { %v636_v13 = vsub.f32 %v633_v11, %v635_v9  ;;  %v762_v9 = vld [vmem:[#allocation4] ss:$8 sm:$0x3]  ;;  %v757_v11 = vmul.f32 0.5690644, %v756_v3  ;;  %vm1915_vm8 = vmand %vm796_vm12, %vm867_vm2 }
 0x195   : > { %v638_v15 = vadd.f32 %v637_v14, %v636_v13  ;;  %v760_v14 = vmul.f32 0.55031365, %v759_v8 }
 0x197   : > { %v640_v16 = vsel %vm639_vm15, -70.0, %v638_v15  ;;  %vm1879_vm15 = vmand %vm796_vm12, %vm797_vm5  ;;  %v763_v15 = vmul.f32 0.53475523, %v762_v9 }
 0x198   : > { %645 = vst.msk [vmem:[#allocation2] sm:$0x3] %vm1767_vm4, %v640_v16  ;;  %1119 = vst.msk [vmem:[%s1723_s10 + $0x4] ss:$8 sm:$0x3] %vm1767_vm4, %v640_v16  ;;  %v641_v17 = vsub.f32 %v640_v16, %v622_v52 }
 0x199   : > { %v738_v41 = vld [vmem:[%s1721_s24] sm:$0x44]  ;;  %vm802_vm1 = vmor %vm1886_vm0, %vm1879_vm15 }
 0x19a   : > { %643 = vst.msk [vmem:[#allocation4 + $0x4] ss:$8 sm:$0x3] %vm1767_vm4, %v641_v17 }
 0x19f   : > { %v681_v18 = vld [vmem:[#allocation2] sm:$0x3] }
 0x1a0   : > { %vm701_vm6 = vcmp.ge.f32.partialorder %v681_v18, -50.0  ;;  %v699_v45 = vmul.f32 0.9706168, %v681_v18 }
 0x1a1   : > { %v684_v21 = vld [vmem:[#allocation4 + $0x4] ss:$8 sm:$0x3]  ;;  %v1120_v22 = vsel %vm701_vm6, 1.0, %v1503_v0 }
 0x1a2   : > { %v685_v23 = vmul.f32 0.66712356, %v684_v21  ;;  %v714_v24 = vrot.slane %v1120_v22, %v1778_v1  ;;  %v718_v25 = vrot.slane %v1120_v22, %v1780_v2  ;;  %v750_v51 = vld [vmem:[#allocation4 + $0x4] ss:$8 sm:$0x3] }
 0x1a3   : > { %v751_v62 = vmul.f32 0.62320846, %v750_v51 }
 0x1a4   : > { %v686_v29 = vsub.f32 %v683_v19, %v685_v23  ;;  %v1148_v31 = vpack.c.bf16 %v718_v25, %v714_v24  ;;  %v811_v23 = vld [vmem:[#allocation5 + $0x7] ss:$8 sm:$0x3] }
 0x1a6   : > { %v689_v34 = vsub.f32 %v686_v29, %v688_v30  ;;  %v729_v36 = vshll.u32 %v1148_v31, 16  ;;  %v818_v31 = vld [vmem:[#allocation4 + $0x4] ss:$8 sm:$0x3] }
 0x1a8   : > { %v692_v37 = vsub.f32 %v689_v34, %v691_v35  ;;  %v731_v40 = vrot.slane %v729_v36, 6  ;;  %v821_v34 = vld [vmem:[#allocation4 + $0x3] ss:$8 sm:$0x3]  ;;  %v819_v35 = vmul.f32 0.59246516, %v818_v31 }
 0x1aa   : > { %v695_v42 = vsub.f32 %v692_v37, %v694_v38  ;;  %v739_v43 = vsel %vm737_vm11, %v731_v40, %v738_v41  ;;  %v824_v37 = vld [vmem:[#allocation4 + $0x2] ss:$8 sm:$0x3]  ;;  %v827_v38 = vld [vmem:[#allocation4 + $0x1] ss:$8 sm:$0x3] }
 0x1ab   : > { %740 = vst [vmem:[%s1721_s24] sm:$0x44] %v739_v43  ;;  %v822_v40 = vmul.f32 0.5690644, %v821_v34 }
 0x1ac   : > { %v698_v44 = vsub.f32 %v695_v42, %v697_v39  ;;  %v830_v42 = vld [vmem:[#allocation4] ss:$8 sm:$0x3] }
 0x1ae   : > { %v700_v46 = vadd.f32 %v699_v45, %v698_v44  ;;  %v825_v45 = vmul.f32 0.55031365, %v824_v37 }
 0x1b0   : > { %v702_v47 = vsel %vm701_vm6, -70.0, %v700_v46  ;;  %vm869_vm6 = vsmask.f32 7966 }
 0x1b1   : > { %707 = vst.msk [vmem:[#allocation2] sm:$0x3] %vm1767_vm4, %v702_v47  ;;  %1122 = vst.msk [vmem:[%s1723_s10 + $0x5] ss:$8 sm:$0x3] %vm1767_vm4, %v702_v47  ;;  %v703_v48 = vsub.f32 %v702_v47, %v681_v18 }
 0x1b2   : > { %vm1922_vm9 = vmand %vm799_vm7, %vm869_vm6 }
 0x1b3   : > { %705 = vst.msk [vmem:[#allocation4 + $0x5] ss:$8 sm:$0x3] %vm1767_vm4, %v703_v48  ;;  %vm871_vm10 = vmor %vm1922_vm9, %vm1915_vm8  ;;  %v828_v48 = vmul.f32 0.53475523, %v827_v38 }
 0x1b8   : > { %v744_v49 = vld [vmem:[#allocation2] sm:$0x3] }
 0x1b9   : > { %vm767_vm14 = vcmp.ge.f32.partialorder %v744_v49, -50.0  ;;  %v765_v18 = vmul.f32 0.9706168, %v744_v49 }
 0x1ba   : > { %v747_v52 = vld [vmem:[#allocation4 + $0x5] ss:$8 sm:$0x3]  ;;  %v1123_v53 = vsel %vm767_vm14, 1.0, %v1503_v0 }
 0x1bb   : > { %v748_v55 = vmul.f32 0.66712356, %v747_v52  ;;  %v780_v56 = vrot.slane %v1123_v53, %v1778_v1  ;;  %v784_v57 = vrot.slane %v1123_v53, %v1780_v2  ;;  %v815_v24 = vld [vmem:[#allocation4 + $0x5] ss:$8 sm:$0x3] }
 0x1bc   : > { %v816_v33 = vmul.f32 0.62320846, %v815_v24 }
 0x1bd   : > { %v749_v61 = vsub.f32 %v746_v50, %v748_v55  ;;  %v1149_v63 = vpack.c.bf16 %v784_v57, %v780_v56 }
 0x1bf   : > { %v752_v5 = vsub.f32 %v749_v61, %v751_v62  ;;  %v794_v7 = vrot.slane %v1149_v63, 5 }
 0x1c1   : > { %v755_v10 = vsub.f32 %v752_v5, %v754_v6  ;;  %v804_v12 = vsel %vm802_vm1, %v794_v7, %v803_v4 }
 0x1c2   : > { %805 = vst [vmem:[%s1721_s24] sm:$0x88] %v804_v12 }
 0x1c3   : > { %v758_v13 = vsub.f32 %v755_v10, %v757_v11 }
 0x1c5   : > { %v761_v16 = vsub.f32 %v758_v13, %v760_v14 }
 0x1c7   : > { %v764_v17 = vsub.f32 %v761_v16, %v763_v15 }
 0x1c9   : > { %v766_v19 = vadd.f32 %v765_v18, %v764_v17  ;;  %v872_v43 = vld [vmem:[%s1721_s24] sm:$0x88] }
 0x1cb   : > { %v768_v20 = vsel %vm767_vm14, -70.0, %v766_v19 }
 0x1cc   : > { %773 = vst.msk [vmem:[#allocation2] sm:$0x3] %vm1767_vm4, %v768_v20  ;;  %1125 = vst.msk [vmem:[%s1723_s10 + $0x6] ss:$8 sm:$0x3] %vm1767_vm4, %v768_v20  ;;  %v769_v21 = vsub.f32 %v768_v20, %v744_v49 }
 0x1cd   : > { %v831_v49 = vmul.f32 0.5215145, %v830_v42 }
 0x1ce   : > { %771 = vst.msk [vmem:[#allocation4 + $0x6] ss:$8 sm:$0x3] %vm1767_vm4, %v769_v21 }
 0x1d3   : > { %v1904_v22 = vld [vmem:[#allocation2] sm:$0x3] }
 0x1d4   : > { %vm835_vm3 = vcmp.ge.f32.partialorder %v1904_v22, -50.0 }
 0x1d5   : > { %v812_v25 = vld [vmem:[#allocation4 + $0x6] ss:$8 sm:$0x3]  ;;  %v1126_v26 = vsel %vm835_vm3, 1.0, %v1503_v0 }
 0x1d6   : > { %v813_v27 = vmul.f32 0.66712356, %v812_v25  ;;  %v848_v28 = vrot.slane %v1126_v26, %v1778_v1  ;;  %v852_v29 = vrot.slane %v1126_v26, %v1780_v2 }
 0x1d8   : > { %v814_v0 = vsub.f32 %v811_v23, %v813_v27  ;;  %v1150_v1 = vpack.c.bf16 %v852_v29, %v848_v28 }
 0x1da   : > { %v817_v2 = vsub.f32 %v814_v0, %v816_v33  ;;  %v863_v36 = vshll.u32 %v1150_v1, 16 }
 0x1dc   : > { %v820_v39 = vsub.f32 %v817_v2, %v819_v35  ;;  %v865_v41 = vrot.slane %v863_v36, 5 }
 0x1de   : > { %v823_v44 = vsub.f32 %v820_v39, %v822_v40  ;;  %v873_v46 = vsel %vm871_vm10, %v865_v41, %v872_v43 }
 0x1df   : > { %874 = vst [vmem:[%s1721_s24] sm:$0x88] %v873_v46 }
 0x1e0   : > { %v826_v47 = vsub.f32 %v823_v44, %v825_v45 }
 0x1e1   : > { %1348 = shalt.err (!%p1345_p13)
}
 0x1e2   : > { %s1349_s24 = scalar_lea.hbm %s1936_s11, 128  ;;  %s1353_s5 = scalar_lea.hbm %s2047_s2, 768 }
 0x1e3   : > { %p1350_p0 = scmp.ne.s32.totalorder %s1936_s11, %s1349_s24  ;;  %p1354_p6 = scmp.lt.s32.totalorder %s1936_s11, %s2047_s2 }
 0x1e4   : > { %p1355_p8 = scmp.lt.s32.totalorder %s1353_s5, %s1349_s24 }
 0x1e5   : > { %p1351_p7 = pnand %p1350_p0, %p2093_p9 }
 0x1e6   : > { %p1356_p12 = por %p1355_p8, %p1354_p6 }
 0x1e7   : > { %p1352_p4 = pneg %p1351_p7 }
 0x1e9   : > { %p1357_p3 = pnand %p1356_p12, %p1352_p4 }
 0x1eb   : > { %1360 = shalt.err (!%p1357_p3)
}
 0x1ec   : > { %1156 = dma.vmem_to_hbm [thread:$0]  (%p2093_p9), %s1938_s27, 128, %s1936_s11, %s888_s29   ;;  %v829_v50 = vsub.f32 %v826_v47, %v828_v48  ;;  %v833_v52 = vmul.f32 0.9706168, %v1904_v22 }
 0x1ed   : > { %s1138_s4 = sshll.u32 %s1919_s21, 7  ;;  %s925_s8 = sshll.u32 %s1723_s10, 4  ;;  %s1970_s8 = int_to_ptr.vmem [resolvable:$true] %s925_s8 }
 0x1ee   : > { %v832_v51 = vsub.f32 %v829_v50, %v831_v49  ;;  %s1968_s28 = scalar_lea.hbm %s2048_s3, %s1138_s4  ;;  %s1982_s21 = sshra.s32 %s1097_s6, 3 }
 0x1ef   : > { %s893_s27 = scalar_lea.sflag [#allocation13], %s1707_s17  ;;  %s1361_s11 = scalar_lea.vmem %s1970_s8, 256 }
 0x1f0   : > { %v834_v53 = vadd.f32 %v833_v52, %v832_v51  ;;  %p1362_p1 = scmp.ne.s32.totalorder %s1970_s8, %s1361_s11  ;;  %s1509_s29 = smov [#allocation12]  }
 0x1f1   : > { %s1365_s30 = sshll.u32 %s1509_s29, 4  ;;  %s1366_s30 = int_to_ptr.vmem [resolvable:$false] %s1365_s30 }
 0x1f2   : > { %v836_v54 = vsel %vm835_vm3, -70.0, %v834_v53  ;;  %p1363_p5 = pnand %p1362_p1, %p2093_p9  ;;  %s1367_s24 = scalar_lea.vmem %s1366_s30, 512 }
 0x1f3   : > { %841 = vst.msk [vmem:[#allocation2] sm:$0x3] %vm1767_vm4, %v836_v54  ;;  %1128 = vst.msk [vmem:[%s1723_s10 + $0x7] ss:$8 sm:$0x3] %vm1767_vm4, %v836_v54  ;;  %v837_v55 = vsub.f32 %v836_v54, %v1904_v22  ;;  %p1368_p11 = scmp.lt.s32.totalorder %s1970_s8, %s1366_s30  ;;  %p1369_p2 = scmp.lt.s32.totalorder %s1367_s24, %s1361_s11 }
 0x1f4   : > { %p1364_p10 = pneg %p1363_p5 }
 0x1f5   : > { %p1370_p13 = por %p1369_p2, %p1368_p11 }
 0x1f7   : > { %p1371_p0 = pnand %p1370_p13, %p1364_p10 }
 0x1f9   : > { %1374 = shalt.err (!%p1371_p0)
}
 0x1fa   : > { %s1375_s18 = scalar_lea.hbm %s1968_s28, 256  ;;  %s1379_s10 = scalar_lea.hbm %s2048_s3, 1536 }
 0x1fb   : > { %p1376_p7 = scmp.ne.s32.totalorder %s1968_s28, %s1375_s18  ;;  %p1380_p8 = scmp.lt.s32.totalorder %s1968_s28, %s2048_s3 }
 0x1fc   : > { %p1381_p12 = scmp.lt.s32.totalorder %s1379_s10, %s1375_s18 }
 0x1fd   : > { %p1377_p4 = pnand %p1376_p7, %p2093_p9 }
 0x1fe   : > { %p1382_p3 = por %p1381_p12, %p1380_p8 }
 0x1ff   : > { %p1378_p6 = pneg %p1377_p4 }
 0x201   : > { %p1383_p1 = pnand %p1382_p3, %p1378_p6 }
 0x203   : > { %1386 = shalt.err (!%p1383_p1)
}
 0x204   : > { %1157 = dma.vmem_to_hbm [thread:$0]  (%p2093_p9), %s1970_s8, 256, %s1968_s28, %s893_s27   ;;  %839 = vst.msk [vmem:[#allocation4 + $0x7] ss:$8 sm:$0x3] %vm1767_vm4, %v837_v55 }
 0x205   : > { %s1151_s5 = sshll.u32 %s1982_s21, 4 }
 0x206   : > { %s884_s15 = scalar_lea.vmem [#allocation3], %s1151_s5 }
 0x20b   : > { %v878_v56 = vld [vmem:[#allocation4] sm:$0xff]  ;;  %v879_v57 = vld [vmem:[#allocation4 + $0x8] sm:$0xff] }
 0x20c   : > { %885 = vst [vmem:[%s884_s15] sm:$0xff] %v878_v56  ;;  %886 = vst [vmem:[%s884_s15 + $0x8] sm:$0xff] %v879_v57 }
 0x20d PF: > { %p1175_p5 = scmp.ge.s32.totalorder %s1493_s22, 2  ;;  %s937_s19 = sand.u32 1, %s1453_s12  }
 0x20e   : > { %p2094_p10 = scmp.ne.s32.totalorder %s2069_s25, 0  ;;  %s938_s26 = scalar_lea.sflag [#allocation8], %s937_s19 }
 0x210   : > { %p1168_p11 = pnand %p1175_p5, %p2094_p10 }
 0x212   : > { %p1169_p2 = pneg %p1168_p11 }
 0x214   : > { %1444 = dma.done.wait (%p1169_p2), %s938_s26, 128  }
 0x215   : > { %1446 = vsyncadd (%p1169_p2), %s938_s26, 4294967168  ;;  %s947_s4 = scalar_lea.sflag [#allocation13], %s937_s19 }
 0x216   : > { %1448 = dma.done.wait (%p1169_p2), %s947_s4, 256  }
 0x217   : > { %1450 = vsyncadd (%p1169_p2), %s947_s4, 4294967040  ;;  %s26_s22 = sadd.s32 1, %s1493_s22   ;;  %s2095_s8 = sld [smem:[#allocation23_spill]] }
 0x218   : > { %p23_p9 = scmp.ge.s32.totalorder %s26_s22, 8   ;;  %s2096_s7 = sld [smem:[#allocation18_spill]] }
 0x219   : > { %s2097_s17 = sld [smem:[#allocation22_spill]]  ;;  %s2101_s12 = smov %s1457_s13 }
 0x21a   : > { %s2098_s19 = sld [smem:[#allocation19_spill]]  ;;  %s2102_s13 = smov %s1461_s14 }
 0x21b   : > { %s2099_s25 = sld [smem:[#allocation20_spill]]  ;;  %s2104_s15 = smov %s1469_s16 }
 0x21c   : > { %s2100_s21 = sld [smem:[#allocation21_spill]]  ;;  %s2106_s18 = smov %s1485_s20 }
 0x21d   : > { %s2103_s14 = smov %s2095_s8  ;;  %25 = sbr.rel (!%p23_p9) target bundleno = 15 (0xf), region = 154 }
 0x21e   : > { %s2105_s16 = smov %s2096_s7 }
 0x221   : > { %s2107_s20 = smov %s2099_s25 }
 0x222   :  { %952 = vsyncpa [#allocation7], 1 }
 0x223   :  { %954 = vsyncpa [#allocation7 + $0x1], 1 }
 0x224   :  { %955 = vsyncpa [#allocation10], 1 }
 0x225   :  { %957 = vsyncpa [#allocation10 + $0x1], 1 }
 0x226   :  { %958 = vsyncpa [#allocation8], 1 }
 0x227   :  { %960 = vsyncpa [#allocation8 + $0x1], 1 }
 0x228   :  { %961 = vsyncpa [#allocation13], 1 }
 0x229   :  { %963 = vsyncpa [#allocation13 + $0x1], 1 }

</bundles_post_ra>
